<compile_context>
chip_gen: v6e
topology: v6e:2x2x1
jax: 0.10.0
libtpu: 0.0.40
codegen_flags: <defaults>
</compile_context>

<pallas_src>
import jax
import jax.numpy as jnp
from jax.experimental import pallas as pl
from jax.experimental.pallas import tpu as pltpu

BN_EPS = 1e-5
H1, H2 = 512, 1024          # fc1 / fc2 widths (fixed by the module)


def _round_up(n, m):
    return ((n + m - 1) // m) * m


def _pick_tile(n3_pad):
    for tn in (512, 256, 128):
        if n3_pad % tn == 0:
            return tn
    return n3_pad


def _decoder_kernel(x_ref, w1_ref, p1_ref, w2_ref, p2_ref, w3_ref, b3_ref,
                    o_ref, h_ref):
    """Grid axis 0 tiles the fc3 output dimension (N3_pad // tn steps).

    x_ref : (B, F)  f32          w1_ref: (F,  512)  bf16   p1_ref: (2, 512)  f32
    w2_ref: (512, 1024) bf16     p2_ref: (2, 1024)  f32
    w3_ref: (1024, tn)  bf16     b3_ref: (1, tn)    f32    o_ref : (B, tn)   f32
    h_ref : (B, 1024) bf16 VMEM scratch, persistent across grid steps.
    """

    @pl.when(pl.program_id(0) == 0)
    def _():
        def linear_bn_relu(h_bf16, w_ref, p_ref):
            y = jnp.dot(h_bf16, w_ref[...], preferred_element_type=jnp.float32)
            # Training-mode BatchNorm1d, single-pass batch statistics.
            inv_b = 1.0 / y.shape[0]
            mean = jnp.sum(y, axis=0, keepdims=True) * inv_b
            var = jnp.sum(y * y, axis=0, keepdims=True) * inv_b - mean * mean
            y = (y - mean) * jax.lax.rsqrt(var + BN_EPS)
            y = y * p_ref[0:1, :] + p_ref[1:2, :]            # gamma, beta
            return jnp.maximum(y, 0.0).astype(jnp.bfloat16)

        h1 = linear_bn_relu(x_ref[...].astype(jnp.bfloat16), w1_ref, p1_ref)
        h_ref[...] = linear_bn_relu(h1, w2_ref, p2_ref)

    y = jnp.dot(h_ref[...], w3_ref[...], preferred_element_type=jnp.float32)
    o_ref[...] = y + b3_ref[...]


def pointnet2_decoder_forward(params, x, num_points):
    B, F = x.shape
    n3 = num_points * 3
    n3_pad = _round_up(n3, 128)          # lane-dense output stores
    tn = _pick_tile(n3_pad)
    nt = n3_pad // tn

    grid_spec = pltpu.PrefetchScalarGridSpec(
        num_scalar_prefetch=0,
        grid=(nt,),
        in_specs=[
            pl.BlockSpec((B, F), lambda j: (0, 0)),          # x  (resident)
            pl.BlockSpec((F, H1), lambda j: (0, 0)),         # w1 (resident)
            pl.BlockSpec((2, H1), lambda j: (0, 0)),         # p1 (resident)
            pl.BlockSpec((H1, H2), lambda j: (0, 0)),        # w2 (resident)
            pl.BlockSpec((2, H2), lambda j: (0, 0)),         # p2 (resident)
            pl.BlockSpec((H2, tn), lambda j: (0, j)),        # w3 (streamed)
            pl.BlockSpec((1, tn), lambda j: (0, j)),         # b3 (streamed)
        ],
        out_specs=pl.BlockSpec((B, tn), lambda j: (0, j)),
        scratch_shapes=[pltpu.VMEM((B, H2), jnp.bfloat16)],  # persistent h
    )

    out = pl.pallas_call(
        _decoder_kernel,
        out_shape=jax.ShapeDtypeStruct((B, n3_pad), jnp.float32),
        grid_spec=grid_spec,
        compiler_params=pltpu.CompilerParams(
            dimension_semantics=("arbitrary",),
            vmem_limit_bytes=32 * 1024 * 1024,
        ),
    )(x, params["w1"], params["p1"], params["w2"], params["p2"],
      params["w3"], params["b3"])

    # torch: x.view(-1, 3, num_points) -- row-major reshape.
    return out[:, :n3].reshape(-1, 3, num_points)


def init_params(key, feature_dim, num_points):
    """PyTorch-Linear-style init (uniform +-1/sqrt(fan_in)).

    Weights are generated in PyTorch (out, in) layout, transposed ONCE to
    (in, out) and cast to bf16.  fc1/fc2 biases are omitted: they are exactly
    cancelled by the training-mode BN mean subtraction.  BN gamma/beta use the
    PyTorch defaults (1, 0) and are packed into a (2, N) f32 array.  w3/b3 are
    zero-padded along the output dim to a multiple of 128 for lane-dense
    stores; the wrapper slices the padding off.
    """
    n3 = num_points * 3
    n3_pad = _round_up(n3, 128)
    dims = [(feature_dim, H1), (H1, H2), (H2, n3)]
    params = {}
    for idx, (n_in, n_out) in enumerate(dims, start=1):
        key, kw, kb = jax.random.split(key, 3)
        bound = 1.0 / jnp.sqrt(jnp.float32(n_in))
        w_oi = jax.random.uniform(kw, (n_out, n_in), jnp.float32, -bound, bound)
        b = jax.random.uniform(kb, (n_out,), jnp.float32, -bound, bound)
        w_io = jnp.transpose(w_oi)                           # (in, out), once
        if idx < 3:
            params[f"w{idx}"] = w_io.astype(jnp.bfloat16)
            params[f"p{idx}"] = jnp.stack(
                [jnp.ones((n_out,), jnp.float32),            # gamma
                 jnp.zeros((n_out,), jnp.float32)])          # beta
        else:
            w_pad = jnp.zeros((n_in, n3_pad), jnp.float32).at[:, :n3].set(w_io)
            b_pad = jnp.zeros((n3_pad,), jnp.float32).at[:n3].set(b)
            params["w3"] = w_pad.astype(jnp.bfloat16)
            params["b3"] = b_pad.reshape(1, n3_pad)
    return params


def reference_forward(params, x, num_points):
    """Pure-JAX reference mirroring the kernel math (same param layout)."""
    def bn_relu(h, w, p):
        y = jnp.dot(h, w, preferred_element_type=jnp.float32)
        m = jnp.mean(y, axis=0, keepdims=True)
        v = jnp.mean(y * y, axis=0, keepdims=True) - m * m
        y = (y - m) * jax.lax.rsqrt(v + BN_EPS)
        y = y * p[0:1, :] + p[1:2, :]
        return jnp.maximum(y, 0.0).astype(jnp.bfloat16)

    h = bn_relu(x.astype(jnp.bfloat16), params["w1"], params["p1"])
    h = bn_relu(h, params["w2"], params["p2"])
    out = jnp.dot(h, params["w3"], preferred_element_type=jnp.float32) + params["b3"]
    n3 = num_points * 3
    return out[:, :n3].reshape(-1, 3, num_points)


if __name__ == "__main__":
    B, FEATURE_DIM, NUM_POINTS = 4, 32, 64

    key = jax.random.PRNGKey(0)
    key, kx = jax.random.split(key)
    x = jax.random.normal(kx, (B, FEATURE_DIM), jnp.float32)
    params = init_params(key, FEATURE_DIM, NUM_POINTS)

    out = pointnet2_decoder_forward(params, x, NUM_POINTS)
    out = jax.block_until_ready(out)

    assert out.shape == (B, 3, NUM_POINTS), out.shape
    ref = reference_forward(params, x, NUM_POINTS)
    err = float(jnp.max(jnp.abs(out - ref)))
    assert jnp.allclose(out, ref, atol=2e-3, rtol=2e-3), err

    print("KERNEL_OK")
</pallas_src>

<mosaic_0001>
module attributes {stable_mosaic.version = 11 : i64} {
  func.func @_decoder_kernel(%arg0: i32, %arg1: memref<4x32xf32, #tpu.memory_space<vmem>>, %arg2: memref<32x512xbf16, #tpu.memory_space<vmem>>, %arg3: memref<2x512xf32, #tpu.memory_space<vmem>>, %arg4: memref<512x1024xbf16, #tpu.memory_space<vmem>>, %arg5: memref<2x1024xf32, #tpu.memory_space<vmem>>, %arg6: memref<1024x256xbf16, #tpu.memory_space<vmem>>, %arg7: memref<1x256xf32, #tpu.memory_space<vmem>>, %arg8: memref<4x256xf32, #tpu.memory_space<vmem>>, %arg9: memref<4x1024xbf16, #tpu.memory_space<vmem>>) attributes {dimension_semantics = [#tpu.dimension_semantics<arbitrary>], iteration_bounds = array<i64: 1>, scalar_prefetch = 0 : i64, scratch_operands = 1 : i64, tpu.core_type = #tpu.core_type<tc>, window_params = [{pipeline_mode = #tpu.pipeline_mode<synchronous>, transform_indices = @transform_0, window_bounds = array<i64: 4, 32>}, {pipeline_mode = #tpu.pipeline_mode<synchronous>, transform_indices = @transform_1, window_bounds = array<i64: 32, 512>}, {pipeline_mode = #tpu.pipeline_mode<synchronous>, transform_indices = @transform_2, window_bounds = array<i64: 2, 512>}, {pipeline_mode = #tpu.pipeline_mode<synchronous>, transform_indices = @transform_3, window_bounds = array<i64: 512, 1024>}, {pipeline_mode = #tpu.pipeline_mode<synchronous>, transform_indices = @transform_4, window_bounds = array<i64: 2, 1024>}, {transform_indices = @transform_5, window_bounds = array<i64: 1024, 256>}, {transform_indices = @transform_6, window_bounds = array<i64: 1, 256>}, {transform_indices = @transform_7, window_bounds = array<i64: 4, 256>}]} {
    %c0_i32 = arith.constant 0 : i32
    %0 = arith.cmpi eq, %arg0, %c0_i32 : i32
    %1 = arith.extui %0 : i1 to i32
    %c0_i32_0 = arith.constant 0 : i32
    %2 = arith.cmpi ne, %1, %c0_i32_0 : i32
    scf.if %2 {
      %c0_8 = arith.constant 0 : index
      %c0_9 = arith.constant 0 : index
      %10 = vector.load %arg1[%c0_8, %c0_9] : memref<4x32xf32, #tpu.memory_space<vmem>>, vector<4x32xf32>
      %11 = arith.truncf %10 : vector<4x32xf32> to vector<4x32xbf16>
      %c0_10 = arith.constant 0 : index
      %c0_11 = arith.constant 0 : index
      %12 = vector.load %arg2[%c0_10, %c0_11] : memref<32x512xbf16, #tpu.memory_space<vmem>>, vector<32x512xbf16>
      %cst_12 = arith.constant dense<0.000000e+00> : vector<4x512xf32>
      %13 = tpu.matmul %11, %12, %cst_12 {dimension_numbers = #tpu.dot_dimension_numbers<[1], [0], [0], [1], [0, 0, 1, 1], [], []>} : vector<4x32xbf16>, vector<32x512xbf16>, vector<4x512xf32> -> vector<4x512xf32>
      %cst_13 = arith.constant dense<0.000000e+00> : vector<512xf32>
      %14 = vector.multi_reduction <add>, %13, %cst_13 [0] : vector<4x512xf32> to vector<512xf32>
      %15 = vector.shape_cast %14 : vector<512xf32> to vector<1x512xf32>
      %cst_14 = arith.constant 2.500000e-01 : f32
      %16 = vector.broadcast %cst_14 : f32 to vector<1x512xf32>
      %17 = arith.mulf %15, %16 : vector<1x512xf32>
      %18 = arith.mulf %13, %13 : vector<4x512xf32>
      %cst_15 = arith.constant dense<0.000000e+00> : vector<512xf32>
      %19 = vector.multi_reduction <add>, %18, %cst_15 [0] : vector<4x512xf32> to vector<512xf32>
      %20 = vector.shape_cast %19 : vector<512xf32> to vector<1x512xf32>
      %cst_16 = arith.constant 2.500000e-01 : f32
      %21 = vector.broadcast %cst_16 : f32 to vector<1x512xf32>
      %22 = arith.mulf %20, %21 : vector<1x512xf32>
      %23 = arith.mulf %17, %17 : vector<1x512xf32>
      %24 = arith.subf %22, %23 : vector<1x512xf32>
      %25 = vector.broadcast %17 : vector<1x512xf32> to vector<4x512xf32>
      %26 = arith.subf %13, %25 : vector<4x512xf32>
      %cst_17 = arith.constant 9.99999974E-6 : f32
      %27 = vector.broadcast %cst_17 : f32 to vector<1x512xf32>
      %28 = arith.addf %24, %27 : vector<1x512xf32>
      %29 = math.rsqrt %28 : vector<1x512xf32>
      %30 = vector.broadcast %29 : vector<1x512xf32> to vector<4x512xf32>
      %31 = arith.mulf %26, %30 : vector<4x512xf32>
      %c0_18 = arith.constant 0 : index
      %c0_19 = arith.constant 0 : index
      %32 = vector.load %arg3[%c0_18, %c0_19] : memref<2x512xf32, #tpu.memory_space<vmem>>, vector<1x512xf32>
      %33 = vector.broadcast %32 : vector<1x512xf32> to vector<4x512xf32>
      %34 = arith.mulf %31, %33 : vector<4x512xf32>
      %c1 = arith.constant 1 : index
      %c0_20 = arith.constant 0 : index
      %35 = vector.load %arg3[%c1, %c0_20] : memref<2x512xf32, #tpu.memory_space<vmem>>, vector<1x512xf32>
      %36 = vector.broadcast %35 : vector<1x512xf32> to vector<4x512xf32>
      %37 = arith.addf %34, %36 : vector<4x512xf32>
      %cst_21 = arith.constant 0.000000e+00 : f32
      %38 = vector.broadcast %cst_21 : f32 to vector<4x512xf32>
      %39 = arith.maximumf %37, %38 : vector<4x512xf32>
      %40 = arith.truncf %39 : vector<4x512xf32> to vector<4x512xbf16>
      %c0_22 = arith.constant 0 : index
      %c0_23 = arith.constant 0 : index
      %41 = vector.load %arg4[%c0_22, %c0_23] : memref<512x1024xbf16, #tpu.memory_space<vmem>>, vector<512x1024xbf16>
      %cst_24 = arith.constant dense<0.000000e+00> : vector<4x1024xf32>
      %42 = tpu.matmul %40, %41, %cst_24 {dimension_numbers = #tpu.dot_dimension_numbers<[1], [0], [0], [1], [0, 0, 1, 1], [], []>} : vector<4x512xbf16>, vector<512x1024xbf16>, vector<4x1024xf32> -> vector<4x1024xf32>
      %cst_25 = arith.constant dense<0.000000e+00> : vector<1024xf32>
      %43 = vector.multi_reduction <add>, %42, %cst_25 [0] : vector<4x1024xf32> to vector<1024xf32>
      %44 = vector.shape_cast %43 : vector<1024xf32> to vector<1x1024xf32>
      %cst_26 = arith.constant 2.500000e-01 : f32
      %45 = vector.broadcast %cst_26 : f32 to vector<1x1024xf32>
      %46 = arith.mulf %44, %45 : vector<1x1024xf32>
      %47 = arith.mulf %42, %42 : vector<4x1024xf32>
      %cst_27 = arith.constant dense<0.000000e+00> : vector<1024xf32>
      %48 = vector.multi_reduction <add>, %47, %cst_27 [0] : vector<4x1024xf32> to vector<1024xf32>
      %49 = vector.shape_cast %48 : vector<1024xf32> to vector<1x1024xf32>
      %cst_28 = arith.constant 2.500000e-01 : f32
      %50 = vector.broadcast %cst_28 : f32 to vector<1x1024xf32>
      %51 = arith.mulf %49, %50 : vector<1x1024xf32>
      %52 = arith.mulf %46, %46 : vector<1x1024xf32>
      %53 = arith.subf %51, %52 : vector<1x1024xf32>
      %54 = vector.broadcast %46 : vector<1x1024xf32> to vector<4x1024xf32>
      %55 = arith.subf %42, %54 : vector<4x1024xf32>
      %cst_29 = arith.constant 9.99999974E-6 : f32
      %56 = vector.broadcast %cst_29 : f32 to vector<1x1024xf32>
      %57 = arith.addf %53, %56 : vector<1x1024xf32>
      %58 = math.rsqrt %57 : vector<1x1024xf32>
      %59 = vector.broadcast %58 : vector<1x1024xf32> to vector<4x1024xf32>
      %60 = arith.mulf %55, %59 : vector<4x1024xf32>
      %c0_30 = arith.constant 0 : index
      %c0_31 = arith.constant 0 : index
      %61 = vector.load %arg5[%c0_30, %c0_31] : memref<2x1024xf32, #tpu.memory_space<vmem>>, vector<1x1024xf32>
      %62 = vector.broadcast %61 : vector<1x1024xf32> to vector<4x1024xf32>
      %63 = arith.mulf %60, %62 : vector<4x1024xf32>
      %c1_32 = arith.constant 1 : index
      %c0_33 = arith.constant 0 : index
      %64 = vector.load %arg5[%c1_32, %c0_33] : memref<2x1024xf32, #tpu.memory_space<vmem>>, vector<1x1024xf32>
      %65 = vector.broadcast %64 : vector<1x1024xf32> to vector<4x1024xf32>
      %66 = arith.addf %63, %65 : vector<4x1024xf32>
      %cst_34 = arith.constant 0.000000e+00 : f32
      %67 = vector.broadcast %cst_34 : f32 to vector<4x1024xf32>
      %68 = arith.maximumf %66, %67 : vector<4x1024xf32>
      %69 = arith.truncf %68 : vector<4x1024xf32> to vector<4x1024xbf16>
      %c0_35 = arith.constant 0 : index
      %c0_36 = arith.constant 0 : index
      %70 = vector.load %arg9[%c0_35, %c0_36] : memref<4x1024xbf16, #tpu.memory_space<vmem>>, vector<4x1024xbf16>
      tpu.vector_store %arg9[%c0_35, %c0_36], %69 {strides = array<i32>} : memref<4x1024xbf16, #tpu.memory_space<vmem>>, vector<4x1024xbf16>,
    } else {
    }
    %c0 = arith.constant 0 : index
    %c0_1 = arith.constant 0 : index
    %3 = vector.load %arg9[%c0, %c0_1] : memref<4x1024xbf16, #tpu.memory_space<vmem>>, vector<4x1024xbf16>
    %c0_2 = arith.constant 0 : index
    %c0_3 = arith.constant 0 : index
    %4 = vector.load %arg6[%c0_2, %c0_3] : memref<1024x256xbf16, #tpu.memory_space<vmem>>, vector<1024x256xbf16>
    %cst = arith.constant dense<0.000000e+00> : vector<4x256xf32>
    %5 = tpu.matmul %3, %4, %cst {dimension_numbers = #tpu.dot_dimension_numbers<[1], [0], [0], [1], [0, 0, 1, 1], [], []>} : vector<4x1024xbf16>, vector<1024x256xbf16>, vector<4x256xf32> -> vector<4x256xf32>
    %c0_4 = arith.constant 0 : index
    %c0_5 = arith.constant 0 : index
    %6 = vector.load %arg7[%c0_4, %c0_5] : memref<1x256xf32, #tpu.memory_space<vmem>>, vector<1x256xf32>
    %7 = vector.broadcast %6 : vector<1x256xf32> to vector<4x256xf32>
    %8 = arith.addf %5, %7 : vector<4x256xf32>
    %c0_6 = arith.constant 0 : index
    %c0_7 = arith.constant 0 : index
    %9 = vector.load %arg8[%c0_6, %c0_7] : memref<4x256xf32, #tpu.memory_space<vmem>>, vector<4x256xf32>
    tpu.vector_store %arg8[%c0_6, %c0_7], %8 {strides = array<i32>} : memref<4x256xf32, #tpu.memory_space<vmem>>, vector<4x256xf32>,
    return
  }
  func.func @transform_0(%arg0: i32) -> (i32, i32) {
    %c0_i32 = arith.constant 0 : i32
    %c0_i32_0 = arith.constant 0 : i32
    %c0_i32_1 = arith.constant 0 : i32
    return %c0_i32, %c0_i32_0 : i32, i32
  }
  func.func @transform_1(%arg0: i32) -> (i32, i32) {
    %c0_i32 = arith.constant 0 : i32
    %c0_i32_0 = arith.constant 0 : i32
    %c0_i32_1 = arith.constant 0 : i32
    return %c0_i32, %c0_i32_0 : i32, i32
  }
  func.func @transform_2(%arg0: i32) -> (i32, i32) {
    %c0_i32 = arith.constant 0 : i32
    %c0_i32_0 = arith.constant 0 : i32
    %c0_i32_1 = arith.constant 0 : i32
    return %c0_i32, %c0_i32_0 : i32, i32
  }
  func.func @transform_3(%arg0: i32) -> (i32, i32) {
    %c0_i32 = arith.constant 0 : i32
    %c0_i32_0 = arith.constant 0 : i32
    %c0_i32_1 = arith.constant 0 : i32
    return %c0_i32, %c0_i32_0 : i32, i32
  }
  func.func @transform_4(%arg0: i32) -> (i32, i32) {
    %c0_i32 = arith.constant 0 : i32
    %c0_i32_0 = arith.constant 0 : i32
    %c0_i32_1 = arith.constant 0 : i32
    return %c0_i32, %c0_i32_0 : i32, i32
  }
  func.func @transform_5(%arg0: i32) -> (i32, i32) {
    %c0_i32 = arith.constant 0 : i32
    %c0_i32_0 = arith.constant 0 : i32
    return %c0_i32, %arg0 : i32, i32
  }
  func.func @transform_6(%arg0: i32) -> (i32, i32) {
    %c0_i32 = arith.constant 0 : i32
    %c0_i32_0 = arith.constant 0 : i32
    return %c0_i32, %arg0 : i32, i32
  }
  func.func @transform_7(%arg0: i32) -> (i32, i32) {
    %c0_i32 = arith.constant 0 : i32
    %c0_i32_0 = arith.constant 0 : i32
    return %c0_i32, %arg0 : i32, i32
  }
}

</mosaic_0001>

<bundles_post_ra>
// kernel: tpu_custom_call.1
= control target key start
LH: loop header
LB: loop body
LE: loop exit
PB: predicated region body
PF: predicated region fallthrough
CT: control target
= control target key end

     0   :  { %12 = vsyncpa [#allocation4], 0  ;;  %s4705_s0 = inlined_call_operand.hbm [shape: f32[4,32], index: 0, kind: input, shape index: {}]   ;;  %s4706_s1 = inlined_call_operand.hbm [shape: bf16[32,512], index: 1, kind: input, shape index: {}]   ;;  %s4707_s2 = inlined_call_operand.hbm [shape: f32[2,512], index: 2, kind: input, shape index: {}]   ;;  %s4708_s3 = inlined_call_operand.hbm [shape: bf16[512,1024], index: 3, kind: input, shape index: {}]   ;;  %s4709_s4 = inlined_call_operand.hbm [shape: f32[2,1024], index: 4, kind: input, shape index: {}]   ;;  %s4710_s5 = inlined_call_operand.hbm [shape: bf16[1024,256], index: 5, kind: input, shape index: {}]   ;;  %s4711_s6 = inlined_call_operand.vmem [shape: f32[1,256], index: 6, kind: input, shape index: {}]   ;;  %s4712_s7 = inlined_call_operand.hbm [shape: f32[4,256], index: 7, kind: output, shape index: {}]  }
   0x1   :  { %13 = vsyncpa [#allocation7], 0 }
   0x2   :  { %14 = vsyncpa [#allocation10], 0 }
   0x3   :  { %15 = vsyncpa [#allocation13], 0 }
   0x4   :  { %16 = vsyncpa [#allocation5], 0  ;;  %s4415_s24 = smov [#allocation6]  }
   0x5   :  { %s32_s25 = sshll.u32 %s4415_s24, 4  ;;  %s33_s25 = int_to_ptr.vmem [resolvable:$true] %s32_s25 }
   0x6   :  { %s4273_s26 = scalar_lea.vmem %s33_s25, 1024  ;;  %p4278_p1 = scmp.lt.s32.totalorder %s33_s25, %s33_s25 }
   0x7   :  { %p4274_p0 = scmp.ne.s32.totalorder %s33_s25, %s4273_s26  ;;  %p4279_p2 = scmp.lt.s32.totalorder %s4273_s26, %s4273_s26 }
   0x9   :  { %p4280_p3 = por %p4279_p2, %p4278_p1 }
   0xb   :  { %p4281_p4 = pnand %p4280_p3, %p4274_p0 }
   0xd   :  { %4284 = shalt.err (!%p4281_p4)
}
   0xe   :  { %s4416_s27 = smov 256   ;;  %s4417_s28 = smov 16  }
   0xf   :  { %38 = dma.hbm_to_vmem [thread:$0]  %s4706_s1, 1024, %s33_s25, [#allocation7], %s4416_s27, %s4416_s27, %s4417_s28  }
  0x10   :  { %s4418_s8 = smov [#allocation9]  }
  0x11   :  { %s54_s9 = sshll.u32 %s4418_s8, 4  ;;  %s55_s9 = int_to_ptr.vmem [resolvable:$true] %s54_s9 }
  0x12   :  { %s4293_s10 = scalar_lea.vmem %s55_s9, 32768  ;;  %p4298_p6 = scmp.lt.s32.totalorder %s55_s9, %s55_s9 }
  0x13   :  { %p4294_p5 = scmp.ne.s32.totalorder %s55_s9, %s4293_s10  ;;  %p4299_p7 = scmp.lt.s32.totalorder %s4293_s10, %s4293_s10 }
  0x15   :  { %p4300_p8 = por %p4299_p7, %p4298_p6 }
  0x17   :  { %p4301_p9 = pnand %p4300_p8, %p4294_p5 }
  0x19   :  { %4304 = shalt.err (!%p4301_p9)
}
  0x1a   :  { %s4419_s11 = smov 512   ;;  %s4420_s12 = smov 32  }
  0x1b   :  { %60 = dma.hbm_to_vmem [thread:$0]  %s4708_s3, 32768, %s55_s9, [#allocation10], %s4419_s11, %s4419_s11, %s4420_s12  }
  0x1c   :  { %s4421_s15 = smov [#allocation3]   ;;  %s4422_s17 = smov [#allocation8]  }
  0x1d   :  { %s23_s16 = sshll.u32 %s4421_s15, 4  ;;  %s45_s1 = sshll.u32 %s4422_s17, 4  ;;  %s24_s16 = int_to_ptr.vmem [resolvable:$true] %s23_s16  ;;  %s46_s1 = int_to_ptr.vmem [resolvable:$true] %s45_s1 }
  0x1e   :  { %s4313_s18 = scalar_lea.vmem %s24_s16, 64  ;;  %p4318_p11 = scmp.lt.s32.totalorder %s24_s16, %s24_s16 }
  0x1f   :  { %p4314_p10 = scmp.ne.s32.totalorder %s24_s16, %s4313_s18  ;;  %p4319_p12 = scmp.lt.s32.totalorder %s4313_s18, %s4313_s18 }
  0x21   :  { %p4320_p13 = por %p4319_p12, %p4318_p11 }
  0x23   :  { %p4321_p0 = pnand %p4320_p13, %p4314_p10 }
  0x25   :  { %4324 = shalt.err (!%p4321_p0)
}
  0x26   :  { %26 = dma.hbm_to_vmem [thread:$0]  %s4705_s0, 64, %s24_s16, [#allocation4]  }
  0x27   :  { %s4333_s21 = scalar_lea.vmem %s46_s1, 128  ;;  %p4338_p2 = scmp.lt.s32.totalorder %s46_s1, %s46_s1 }
  0x28   :  { %p4334_p1 = scmp.ne.s32.totalorder %s46_s1, %s4333_s21  ;;  %p4339_p3 = scmp.lt.s32.totalorder %s4333_s21, %s4333_s21 }
  0x2a   :  { %p4340_p4 = por %p4339_p3, %p4338_p2 }
  0x2c   :  { %p4341_p5 = pnand %p4340_p4, %p4334_p1 }
  0x2e   :  { %4344 = shalt.err (!%p4341_p5)
}
  0x2f   :  { %48 = dma.hbm_to_vmem [thread:$0]  %s4707_s2, 128, %s46_s1, [#allocation7]  }
  0x30   :  { %s4423_s23 = smov [#allocation11]   ;;  %s4424_s25 = smov [#allocation12]  }
  0x31   :  { %s67_s24 = sshll.u32 %s4423_s23, 4  ;;  %s76_s26 = sshll.u32 %s4424_s25, 4  ;;  %s68_s24 = int_to_ptr.vmem [resolvable:$true] %s67_s24  ;;  %s77_s26 = int_to_ptr.vmem [resolvable:$true] %s76_s26 }
  0x32   :  { %s4353_s27 = scalar_lea.vmem %s68_s24, 256  ;;  %p4358_p7 = scmp.lt.s32.totalorder %s68_s24, %s68_s24 }
  0x33   :  { %p4354_p6 = scmp.ne.s32.totalorder %s68_s24, %s4353_s27  ;;  %p4359_p8 = scmp.lt.s32.totalorder %s4353_s27, %s4353_s27 }
  0x35   :  { %p4360_p9 = por %p4359_p8, %p4358_p7 }
  0x37   :  { %p4361_p10 = pnand %p4360_p9, %p4354_p6 }
  0x39   :  { %4364 = shalt.err (!%p4361_p10)
}
  0x3a   :  { %70 = dma.hbm_to_vmem [thread:$0]  %s4709_s4, 256, %s68_s24, [#allocation10]  }
  0x3b   :  { %s4373_s29 = scalar_lea.vmem %s77_s26, 16384  ;;  %p4378_p12 = scmp.lt.s32.totalorder %s77_s26, %s77_s26 }
  0x3c   :  { %p4374_p11 = scmp.ne.s32.totalorder %s77_s26, %s4373_s29  ;;  %p4379_p13 = scmp.lt.s32.totalorder %s4373_s29, %s4373_s29 }
  0x3e   :  { %p4380_p0 = por %p4379_p13, %p4378_p12 }
  0x40   :  { %p4381_p1 = pnand %p4380_p0, %p4374_p11 }
  0x42   :  { %4384 = shalt.err (!%p4381_p1)
}
  0x43   :  { %s4425_s2 = smov 128   ;;  %s4426_s30 = smov 8  }
  0x44   :  { %82 = dma.hbm_to_vmem [thread:$0]  %s4710_s5, 16384, %s77_s26, [#allocation13], %s4425_s2, %s4425_s2, %s4426_s30  }
  0x45   :  { %4405 = dma.done.wait [#allocation4], 64  }
  0x46   :  { %4406 = vsyncadd [#allocation4], 4294967232 }
  0x47   :  { %4407 = dma.done.wait [#allocation7], 1152  }
  0x48   :  { %4408 = vsyncadd [#allocation7], 4294966144 }
  0x49   :  { %4409 = dma.done.wait [#allocation10], 33024  }
  0x4a   :  { %4410 = vsyncadd [#allocation10], 4294934272 }
  0x4b   :  { %4411 = dma.done.wait [#allocation13], 16384  }
  0x4c   :  { %4412 = vsyncadd [#allocation13], 4294950912  ;;  %v4427_v0 = vmov 0   ;;  %v4037_v1 = vld [vmem:[#allocation6 + $0x24] ss:$16 sps:$4 sm:$0xff]   ;;  %v454_v10 = vld [vmem:[#allocation9 + $0x1c0] sm:$0xff] }
  0x4d   :  { %194 = vmatprep.mubr.bf16.mxu0 %v4427_v0  ;;  %235 = vmatprep.mubr.bf16.mxu1 %v4427_v0  ;;  %v4039_v2 = vld [vmem:[#allocation6 + $0x2c] ss:$16 sps:$4 sm:$0xff]   ;;  %v4041_v3 = vld [vmem:[#allocation6 + $0x20] ss:$16 sps:$4 sm:$0xff]   ;;  %v4042_v4 = vld [vmem:[#allocation6 + $0x28] ss:$16 sps:$4 sm:$0xff]  }
  0x4e   :  { %174 = vmatprep.subr.bf16.mxu0 %v4037_v1  ;;  %215 = vmatprep.subr.bf16.mxu1 %v4039_v2  ;;  %v4043_v5 = vld [vmem:[#allocation6 + $0x4] ss:$16 sps:$4 sm:$0xff]   ;;  %v4045_v6 = vld [vmem:[#allocation6 + $0xc] ss:$16 sps:$4 sm:$0xff]   ;;  %v4047_v7 = vld [vmem:[#allocation6] ss:$16 sps:$4 sm:$0xff]  }
  0x4f   :  { %175 = vmatpush1.bf16.msra.mxu0 %v4041_v3  ;;  %216 = vmatpush1.bf16.msra.mxu1 %v4042_v4  ;;  %v4048_v8 = vld [vmem:[#allocation6 + $0x8] ss:$16 sps:$4 sm:$0xff]   ;;  %v108_v9 = vld [vmem:[#allocation3] sm:$0xf]  ;;  %vm158_vm0 = vcmask 261120   ;;  %vm244_vm1 = vcmask 1043456  }
  0x50   :  { %176 = vmatprep.subr.bf16.mxu0 %v4043_v5  ;;  %217 = vmatprep.subr.bf16.mxu1 %v4045_v6  ;;  %v458_v11 = vld [vmem:[#allocation9 + $0x1e0] sm:$0xff]  ;;  %v109_v14 = vpack.c.bf16 %v108_v9, %v108_v9 }
  0x51   :  { %v582_v12 = vld [vmem:[#allocation9 + $0x5c0] sm:$0xff]  ;;  %v3689_v15 = vcombine.high %v454_v10, %v458_v11  ;;  %v3688_v20 = vcombine.low %v454_v10, %v458_v11 }
  0x52   :  { %v586_v13 = vld [vmem:[#allocation9 + $0x5e0] sm:$0xff] }
  0x53   :  { %v3817_v16 = vcombine.high %v582_v12, %v586_v13  ;;  %v446_v17 = vld [vmem:[#allocation9 + $0x180] sm:$0xff]  ;;  %177 = vmatpush1.bf16.msra.mxu0 %v4047_v7  ;;  %218 = vmatpush1.bf16.msra.mxu1 %v4048_v8  ;;  %v3816_v21 = vcombine.low %v582_v12, %v586_v13 }
  0x54   :  { %v450_v18 = vld [vmem:[#allocation9 + $0x1a0] sm:$0xff]  ;;  %1934 = vmatprep.subr.bf16.mxu0 %v3689_v15 }
  0x55   :  { %v574_v19 = vld [vmem:[#allocation9 + $0x580] sm:$0xff]  ;;  %1975 = vmatprep.subr.bf16.mxu1 %v3817_v16  ;;  %v3681_v23 = vcombine.high %v446_v17, %v450_v18  ;;  %v3680_v29 = vcombine.low %v446_v17, %v450_v18 }
  0x56   :  { %v578_v22 = vld [vmem:[#allocation9 + $0x5a0] sm:$0xff]  ;;  %3630 = vmatmul.mubr.msk.bf16.vlgmr.msra.gmra.mxu0 %vm158_vm0, %v109_v14  ;;  %3631 = vmatmul.mubr.msk.bf16.vlgmr.msra.gmra.mxu1 %vm158_vm0, %v109_v14 }
  0x57   :  { %v3809_v24 = vcombine.high %v574_v19, %v578_v22  ;;  %v438_v25 = vld [vmem:[#allocation9 + $0x140] sm:$0xff]  ;;  %1935 = vmatpush1.bf16.msra.mxu0 %v3688_v20  ;;  %1976 = vmatpush1.bf16.msra.mxu1 %v3816_v21  ;;  %v3808_v30 = vcombine.low %v574_v19, %v578_v22 }
  0x58   :  { %v442_v26 = vld [vmem:[#allocation9 + $0x160] sm:$0xff]  ;;  %1936 = vmatprep.subr.bf16.mxu0 %v3681_v23 }
  0x59   :  { %v566_v27 = vld [vmem:[#allocation9 + $0x540] sm:$0xff]  ;;  %1977 = vmatprep.subr.bf16.mxu1 %v3809_v24  ;;  %v3673_v35 = vcombine.high %v438_v25, %v442_v26  ;;  %v3672_v37 = vcombine.low %v438_v25, %v442_v26 }
  0x5a   :  { %v570_v28 = vld [vmem:[#allocation9 + $0x560] sm:$0xff] }
  0x5b   :  { %v430_v31 = vld [vmem:[#allocation9 + $0x100] sm:$0xff]  ;;  %v3801_v36 = vcombine.high %v566_v27, %v570_v28  ;;  %1937 = vmatpush1.bf16.msra.mxu0 %v3680_v29  ;;  %1978 = vmatpush1.bf16.msra.mxu1 %v3808_v30  ;;  %v3800_v38 = vcombine.low %v566_v27, %v570_v28 }
  0x5c   :  { %v434_v32 = vld [vmem:[#allocation9 + $0x120] sm:$0xff]  ;;  %1938 = vmatprep.subr.bf16.mxu0 %v3673_v35 }
  0x5d   :  { %v558_v33 = vld [vmem:[#allocation9 + $0x500] sm:$0xff]  ;;  %1979 = vmatprep.subr.bf16.mxu1 %v3801_v36  ;;  %v3665_v39 = vcombine.high %v430_v31, %v434_v32  ;;  %v3664_v41 = vcombine.low %v430_v31, %v434_v32 }
  0x5e   :  { %v562_v34 = vld [vmem:[#allocation9 + $0x520] sm:$0xff] }
  0x5f   :  { %v3793_v40 = vcombine.high %v558_v33, %v562_v34  ;;  %1939 = vmatpush1.bf16.msra.mxu0 %v3672_v37  ;;  %1980 = vmatpush1.bf16.msra.mxu1 %v3800_v38  ;;  %v3792_v42 = vcombine.low %v558_v33, %v562_v34  ;;  %v422_v43 = vld [vmem:[#allocation9 + $0xc0] sm:$0xff] }
  0x60   :  { %1940 = vmatprep.subr.bf16.mxu0 %v3665_v39  ;;  %v426_v44 = vld [vmem:[#allocation9 + $0xe0] sm:$0xff] }
  0x61   :  { %1981 = vmatprep.subr.bf16.mxu1 %v3793_v40  ;;  %v550_v45 = vld [vmem:[#allocation9 + $0x4c0] sm:$0xff]  ;;  %v3657_v46 = vcombine.high %v422_v43, %v426_v44  ;;  %v3656_v48 = vcombine.low %v422_v43, %v426_v44 }
  0x62   :  { %v554_v47 = vld [vmem:[#allocation9 + $0x4e0] sm:$0xff] }
  0x63   :  { %1941 = vmatpush1.bf16.msra.mxu0 %v3664_v41  ;;  %1982 = vmatpush1.bf16.msra.mxu1 %v3792_v42  ;;  %v3784_v49 = vcombine.low %v550_v45, %v554_v47  ;;  %v3785_v50 = vcombine.high %v550_v45, %v554_v47  ;;  %v414_v51 = vld [vmem:[#allocation9 + $0x80] sm:$0xff] }
  0x64   :  { %1942 = vmatprep.subr.bf16.mxu0 %v3657_v46  ;;  %v418_v52 = vld [vmem:[#allocation9 + $0xa0] sm:$0xff] }
  0x65   :  { %1983 = vmatprep.subr.bf16.mxu1 %v3785_v50  ;;  %v542_v53 = vld [vmem:[#allocation9 + $0x480] sm:$0xff]  ;;  %v3649_v54 = vcombine.high %v414_v51, %v418_v52  ;;  %v3648_v56 = vcombine.low %v414_v51, %v418_v52 }
  0x66   :  { %v546_v55 = vld [vmem:[#allocation9 + $0x4a0] sm:$0xff] }
  0x67   :  { %1943 = vmatpush1.bf16.msra.mxu0 %v3656_v48  ;;  %1984 = vmatpush1.bf16.msra.mxu1 %v3784_v49  ;;  %v3776_v57 = vcombine.low %v542_v53, %v546_v55  ;;  %v3777_v58 = vcombine.high %v542_v53, %v546_v55  ;;  %v406_v59 = vld [vmem:[#allocation9 + $0x40] sm:$0xff] }
  0x68   :  { %1944 = vmatprep.subr.bf16.mxu0 %v3649_v54  ;;  %v410_v60 = vld [vmem:[#allocation9 + $0x60] sm:$0xff] }
  0x69   :  { %1985 = vmatprep.subr.bf16.mxu1 %v3777_v58  ;;  %v534_v61 = vld [vmem:[#allocation9 + $0x440] sm:$0xff]  ;;  %v3641_v62 = vcombine.high %v406_v59, %v410_v60  ;;  %v3640_v0 = vcombine.low %v406_v59, %v410_v60 }
  0x6a   :  { %v538_v63 = vld [vmem:[#allocation9 + $0x460] sm:$0xff] }
  0x6b   :  { %1945 = vmatpush1.bf16.msra.mxu0 %v3648_v56  ;;  %1986 = vmatpush1.bf16.msra.mxu1 %v3776_v57  ;;  %v3768_v1 = vcombine.low %v534_v61, %v538_v63  ;;  %v3769_v2 = vcombine.high %v534_v61, %v538_v63  ;;  %v398_v3 = vld [vmem:[#allocation9] sm:$0xff] }
  0x6c   :  { %1946 = vmatprep.subr.bf16.mxu0 %v3641_v62  ;;  %v402_v4 = vld [vmem:[#allocation9 + $0x20] sm:$0xff] }
  0x6d   :  { %1987 = vmatprep.subr.bf16.mxu1 %v3769_v2  ;;  %v526_v5 = vld [vmem:[#allocation9 + $0x400] sm:$0xff]  ;;  %v3633_v6 = vcombine.high %v398_v3, %v402_v4  ;;  %v3632_v8 = vcombine.low %v398_v3, %v402_v4 }
  0x6e   :  { %v530_v7 = vld [vmem:[#allocation9 + $0x420] sm:$0xff] }
  0x6f   :  { %1947 = vmatpush1.bf16.msra.mxu0 %v3640_v0  ;;  %1988 = vmatpush1.bf16.msra.mxu1 %v3768_v1  ;;  %v3760_v9 = vcombine.low %v526_v5, %v530_v7  ;;  %v3761_v10 = vcombine.high %v526_v5, %v530_v7  ;;  %v518_v11 = vld [vmem:[#allocation9 + $0x3c0] sm:$0xff] }
  0x70   :  { %1948 = vmatprep.subr.bf16.mxu0 %v3633_v6  ;;  %v522_v12 = vld [vmem:[#allocation9 + $0x3e0] sm:$0xff] }
  0x71   :  { %1989 = vmatprep.subr.bf16.mxu1 %v3761_v10  ;;  %v646_v13 = vld [vmem:[#allocation9 + $0x7c0] sm:$0xff]  ;;  %v3753_v14 = vcombine.high %v518_v11, %v522_v12  ;;  %v3752_v16 = vcombine.low %v518_v11, %v522_v12  ;;  %v4488_v11 = vld [vmem:[#allocation9 + $0x1c8] sm:$0xff] }
  0x72   :  { %v650_v15 = vld [vmem:[#allocation9 + $0x7e0] sm:$0xff]  ;;  %v4490_v12 = vld [vmem:[#allocation9 + $0x1e8] sm:$0xff] }
  0x73   :  { %1949 = vmatpush1.bf16.msra.mxu0 %v3632_v8  ;;  %1990 = vmatpush1.bf16.msra.mxu1 %v3760_v9  ;;  %v3880_v17 = vcombine.low %v646_v13, %v650_v15  ;;  %v3881_v18 = vcombine.high %v646_v13, %v650_v15  ;;  %v510_v19 = vld [vmem:[#allocation9 + $0x380] sm:$0xff]  ;;  %v4492_v13 = vld [vmem:[#allocation9 + $0x5c8] sm:$0xff] }
  0x74   :  { %1950 = vmatprep.subr.bf16.mxu0 %v3753_v14  ;;  %v514_v20 = vld [vmem:[#allocation9 + $0x3a0] sm:$0xff]  ;;  %v3691_v14 = vcombine.high %v4488_v11, %v4490_v12  ;;  %v4496_v15 = vld [vmem:[#allocation9 + $0x5e8] sm:$0xff] }
  0x75   :  { %1991 = vmatprep.subr.bf16.mxu1 %v3881_v18  ;;  %v638_v21 = vld [vmem:[#allocation9 + $0x780] sm:$0xff]  ;;  %v3745_v22 = vcombine.high %v510_v19, %v514_v20  ;;  %v3744_v24 = vcombine.low %v510_v19, %v514_v20  ;;  %v3819_v18 = vcombine.high %v4492_v13, %v4496_v15 }
  0x76   :  { %v642_v23 = vld [vmem:[#allocation9 + $0x7a0] sm:$0xff] }
  0x77   :  { %1951 = vmatpush2.bf16.msra.mxu0 %v3752_v16  ;;  %1992 = vmatpush2.bf16.msra.mxu1 %v3880_v17  ;;  %v3872_v25 = vcombine.low %v638_v21, %v642_v23  ;;  %v3873_v26 = vcombine.high %v638_v21, %v642_v23  ;;  %v502_v27 = vld [vmem:[#allocation9 + $0x340] sm:$0xff]  ;;  %v3690_v16 = vcombine.low %v4488_v11, %v4490_v12 }
  0x78   :  { %1952 = vmatprep.subr.bf16.mxu0 %v3745_v22  ;;  %v506_v28 = vld [vmem:[#allocation9 + $0x360] sm:$0xff]  ;;  %v3818_v17 = vcombine.low %v4492_v13, %v4496_v15 }
  0x79   :  { %1993 = vmatprep.subr.bf16.mxu1 %v3873_v26  ;;  %v630_v29 = vld [vmem:[#allocation9 + $0x740] sm:$0xff]  ;;  %v3737_v30 = vcombine.high %v502_v27, %v506_v28  ;;  %v3736_v32 = vcombine.low %v502_v27, %v506_v28 }
  0x7a   :  { %v634_v31 = vld [vmem:[#allocation9 + $0x760] sm:$0xff] }
  0x7b   :  { %1953 = vmatpush2.bf16.msra.mxu0 %v3744_v24  ;;  %1994 = vmatpush2.bf16.msra.mxu1 %v3872_v25  ;;  %v3864_v33 = vcombine.low %v630_v29, %v634_v31  ;;  %v3865_v34 = vcombine.high %v630_v29, %v634_v31  ;;  %v494_v35 = vld [vmem:[#allocation9 + $0x300] sm:$0xff] }
  0x7c   :  { %1954 = vmatprep.subr.bf16.mxu0 %v3737_v30  ;;  %v498_v36 = vld [vmem:[#allocation9 + $0x320] sm:$0xff] }
  0x7d   :  { %1995 = vmatprep.subr.bf16.mxu1 %v3865_v34  ;;  %v622_v37 = vld [vmem:[#allocation9 + $0x700] sm:$0xff]  ;;  %v3729_v38 = vcombine.high %v494_v35, %v498_v36  ;;  %v3728_v40 = vcombine.low %v494_v35, %v498_v36 }
  0x7e   :  { %v626_v39 = vld [vmem:[#allocation9 + $0x720] sm:$0xff] }
  0x7f   :  { %1955 = vmatpush2.bf16.msra.mxu0 %v3736_v32  ;;  %1996 = vmatpush2.bf16.msra.mxu1 %v3864_v33  ;;  %v3856_v41 = vcombine.low %v622_v37, %v626_v39  ;;  %v3857_v42 = vcombine.high %v622_v37, %v626_v39  ;;  %v486_v43 = vld [vmem:[#allocation9 + $0x2c0] sm:$0xff] }
  0x80   :  { %1956 = vmatprep.subr.bf16.mxu0 %v3729_v38  ;;  %v490_v44 = vld [vmem:[#allocation9 + $0x2e0] sm:$0xff] }
  0x81   :  { %1997 = vmatprep.subr.bf16.mxu1 %v3857_v42  ;;  %v614_v45 = vld [vmem:[#allocation9 + $0x6c0] sm:$0xff]  ;;  %v3721_v46 = vcombine.high %v486_v43, %v490_v44  ;;  %v3720_v48 = vcombine.low %v486_v43, %v490_v44 }
  0x82   :  { %v618_v47 = vld [vmem:[#allocation9 + $0x6e0] sm:$0xff] }
  0x83   :  { %1957 = vmatpush2.bf16.msra.mxu0 %v3728_v40  ;;  %1998 = vmatpush2.bf16.msra.mxu1 %v3856_v41  ;;  %v3848_v49 = vcombine.low %v614_v45, %v618_v47  ;;  %v3849_v50 = vcombine.high %v614_v45, %v618_v47  ;;  %v478_v51 = vld [vmem:[#allocation9 + $0x280] sm:$0xff] }
  0x84   :  { %1958 = vmatprep.subr.bf16.mxu0 %v3721_v46  ;;  %v482_v52 = vld [vmem:[#allocation9 + $0x2a0] sm:$0xff] }
  0x85   :  { %1999 = vmatprep.subr.bf16.mxu1 %v3849_v50  ;;  %v606_v53 = vld [vmem:[#allocation9 + $0x680] sm:$0xff]  ;;  %v3713_v54 = vcombine.high %v478_v51, %v482_v52  ;;  %v3712_v56 = vcombine.low %v478_v51, %v482_v52 }
  0x86   :  { %v610_v55 = vld [vmem:[#allocation9 + $0x6a0] sm:$0xff] }
  0x87   :  { %1959 = vmatpush2.bf16.msra.mxu0 %v3720_v48  ;;  %2000 = vmatpush2.bf16.msra.mxu1 %v3848_v49  ;;  %v3840_v57 = vcombine.low %v606_v53, %v610_v55  ;;  %v3841_v58 = vcombine.high %v606_v53, %v610_v55  ;;  %v470_v59 = vld [vmem:[#allocation9 + $0x240] sm:$0xff] }
  0x88   :  { %1960 = vmatprep.subr.bf16.mxu0 %v3713_v54  ;;  %v474_v60 = vld [vmem:[#allocation9 + $0x260] sm:$0xff] }
  0x89   :  { %2001 = vmatprep.subr.bf16.mxu1 %v3841_v58  ;;  %v598_v61 = vld [vmem:[#allocation9 + $0x640] sm:$0xff]  ;;  %v3705_v62 = vcombine.high %v470_v59, %v474_v60  ;;  %v3704_v0 = vcombine.low %v470_v59, %v474_v60 }
  0x8a   :  { %v602_v63 = vld [vmem:[#allocation9 + $0x660] sm:$0xff] }
  0x8b   :  { %1961 = vmatpush2.bf16.msra.mxu0 %v3712_v56  ;;  %2002 = vmatpush2.bf16.msra.mxu1 %v3840_v57  ;;  %v3832_v1 = vcombine.low %v598_v61, %v602_v63  ;;  %v3833_v2 = vcombine.high %v598_v61, %v602_v63  ;;  %v462_v3 = vld [vmem:[#allocation9 + $0x200] sm:$0xff] }
  0x8c   :  { %1962 = vmatprep.subr.bf16.mxu0 %v3705_v62  ;;  %v466_v4 = vld [vmem:[#allocation9 + $0x220] sm:$0xff] }
  0x8d   :  { %v590_v5 = vld [vmem:[#allocation9 + $0x600] sm:$0xff]  ;;  %2003 = vmatprep.subr.bf16.mxu1 %v3833_v2  ;;  %v3696_v6 = vcombine.low %v462_v3, %v466_v4  ;;  %v3697_v7 = vcombine.high %v462_v3, %v466_v4 }
  0x8e   :  { %v594_v8 = vld [vmem:[#allocation9 + $0x620] sm:$0xff] }
  0x8f   :  { %1963 = vmatpush2.bf16.msra.mxu0 %v3704_v0  ;;  %2004 = vmatpush2.bf16.msra.mxu1 %v3832_v1  ;;  %v3824_v9 = vcombine.low %v590_v5, %v594_v8  ;;  %v3825_v10 = vcombine.high %v590_v5, %v594_v8 }
  0x90   :  { %1964 = vmatprep.subr.bf16.mxu0 %v3697_v7 }
  0x91   :  { %2005 = vmatprep.subr.bf16.mxu1 %v3825_v10 }
  0x93   :  { %1965 = vmatpush2.bf16.msra.mxu0 %v3696_v6  ;;  %2006 = vmatpush2.bf16.msra.mxu1 %v3824_v9 }
  0x94   :  { %2016 = vmatprep.subr.bf16.mxu0 %v3691_v14  ;;  %2057 = vmatprep.subr.bf16.mxu1 %v3819_v18 }
 0x116   :  { %v4504_v19 = vpop.f32.mrf.mxu0  ;;  %v4506_v20 = vpop.f32.mrf.mxu1 }
 0x117   :  { %v245_v21 = vsel %vm244_vm1, %v4504_v19, 0.0  ;;  %v277_v22 = vmul.f32 %v4504_v19, %v4504_v19  ;;  %v259_v23 = vsel %vm244_vm1, %v4506_v20, 0.0  ;;  %v279_v24 = vmul.f32 %v4506_v20, %v4506_v20 }
 0x118   :  { %v246_v25 = vrot.slane %v245_v21, 4  ;;  %v260_v26 = vrot.slane %v259_v23, 4  ;;  %v4516_v27 = vpop.f32.mrf.mxu0  ;;  %v4518_v28 = vpop.f32.mrf.mxu1 }
 0x119   :  { %v281_v29 = vsel %vm244_vm1, %v277_v22, 0.0  ;;  %v295_v30 = vsel %vm244_vm1, %v279_v24, 0.0  ;;  %v252_v31 = vsel %vm244_vm1, %v4516_v27, 0.0  ;;  %v278_v32 = vmul.f32 %v4516_v27, %v4516_v27 }
 0x11a   :  { %v247_v33 = vadd.f32 %v246_v25, %v245_v21  ;;  %v282_v34 = vrot.slane %v281_v29, 4  ;;  %v261_v35 = vadd.f32 %v260_v26, %v259_v23  ;;  %v296_v36 = vrot.slane %v295_v30, 4  ;;  %v200_v37 = vpop.f32.mrf.mxu0  ;;  %v241_v38 = vpop.f32.mrf.mxu1 }
 0x11b   :  { %v253_v39 = vrot.slane %v252_v31, 4  ;;  %v288_v40 = vsel %vm244_vm1, %v278_v32, 0.0  ;;  %v266_v41 = vsel %vm244_vm1, %v4518_v28, 0.0  ;;  %v280_v42 = vmul.f32 %v4518_v28, %v4518_v28 }
 0x11c   :  { %v248_v43 = vrot.slane %v247_v33, 2  ;;  %v283_v44 = vadd.f32 %v282_v34, %v281_v29  ;;  %v262_v45 = vrot.slane %v261_v35, 2  ;;  %v297_v46 = vadd.f32 %v296_v36, %v295_v30  ;;  %v201_v47 = vpop.f32.mrf.mxu0  ;;  %v242_v48 = vpop.f32.mrf.mxu1 }
 0x11d   :  { %v254_v49 = vadd.f32 %v253_v39, %v252_v31  ;;  %v289_v50 = vrot.slane %v288_v40, 4  ;;  %v267_v51 = vrot.slane %v266_v41, 4  ;;  %v302_v52 = vsel %vm244_vm1, %v280_v42, 0.0 }
 0x11e   :  { %v249_v53 = vadd.f32 %v248_v43, %v247_v33  ;;  %v284_v54 = vrot.slane %v283_v44, 2  ;;  %v263_v55 = vadd.f32 %v262_v45, %v261_v35  ;;  %v298_v56 = vrot.slane %v297_v46, 2 }
 0x11f   :  { %v255_v57 = vrot.slane %v254_v49, 2  ;;  %v290_v58 = vadd.f32 %v289_v50, %v288_v40  ;;  %v268_v59 = vadd.f32 %v267_v51, %v266_v41  ;;  %v303_v60 = vrot.slane %v302_v52, 4 }
 0x120   :  { %v250_v61 = vrot.slane %v249_v53, 1  ;;  %v285_v62 = vadd.f32 %v284_v54, %v283_v44  ;;  %v264_v63 = vrot.slane %v263_v55, 1  ;;  %v299_v0 = vadd.f32 %v298_v56, %v297_v46  ;;  %v337_v56 = vld [vmem:[#allocation8] ss:$2 sm:$0xf] }
 0x121   :  { %v256_v1 = vadd.f32 %v255_v57, %v254_v49  ;;  %v291_v2 = vrot.slane %v290_v58, 2  ;;  %v269_v3 = vrot.slane %v268_v59, 2  ;;  %v304_v4 = vadd.f32 %v303_v60, %v302_v52 }
 0x122   :  { %v251_v5 = vadd.f32 %v250_v61, %v249_v53  ;;  %v286_v6 = vrot.slane %v285_v62, 1  ;;  %v265_v7 = vadd.f32 %v264_v63, %v263_v55  ;;  %v300_v8 = vrot.slane %v299_v0, 1 }
 0x123   :  { %v257_v9 = vrot.slane %v256_v1, 1  ;;  %v292_v10 = vadd.f32 %v291_v2, %v290_v58  ;;  %v270_v14 = vadd.f32 %v269_v3, %v268_v59  ;;  %v305_v18 = vrot.slane %v304_v4, 2  ;;  %v364_v59 = vld [vmem:[#allocation8 + $0x1] ss:$2 sm:$0xf] }
 0x124   :  { %v273_v21 = vmul.f32 0.25, %v251_v5  ;;  %v287_v22 = vadd.f32 %v286_v6, %v285_v62  ;;  %v275_v23 = vmul.f32 0.25, %v265_v7  ;;  %v301_v24 = vadd.f32 %v300_v8, %v299_v0 }
 0x125   :  { %v258_v25 = vadd.f32 %v257_v9, %v256_v1  ;;  %v293_v26 = vrot.slane %v292_v10, 1  ;;  %v271_v29 = vrot.slane %v270_v14, 1  ;;  %v306_v30 = vadd.f32 %v305_v18, %v304_v4 }
 0x126   :  { %v309_v31 = vmul.f32 0.25, %v287_v22  ;;  %v313_v32 = vmul.f32 %v273_v21, %v273_v21  ;;  %v311_v33 = vmul.f32 0.25, %v301_v24  ;;  %v315_v34 = vmul.f32 %v275_v23, %v275_v23 }
 0x127   :  { %v274_v35 = vmul.f32 0.25, %v258_v25  ;;  %v294_v36 = vadd.f32 %v293_v26, %v292_v10  ;;  %v272_v38 = vadd.f32 %v271_v29, %v270_v14  ;;  %v307_v39 = vrot.slane %v306_v30, 1 }
 0x128   :  { %v317_v37 = vsub.f32 %v309_v31, %v313_v32  ;;  %v319_v40 = vsub.f32 %v311_v33, %v315_v34  ;;  %v339_v48 = vlaneseq  ;;  %v321_v60 = vsub.f32 %v4504_v19, %v273_v21  ;;  %v447_v33 = vld [vmem:[#allocation9 + $0x188] sm:$0xff] }
 0x129   :  { %v310_v41 = vmul.f32 0.25, %v294_v36  ;;  %v314_v42 = vmul.f32 %v274_v35, %v274_v35  ;;  %v276_v44 = vmul.f32 0.25, %v272_v38  ;;  %v308_v45 = vadd.f32 %v307_v39, %v306_v30  ;;  %v451_v34 = vld [vmem:[#allocation9 + $0x1a8] sm:$0xff] }
 0x12a   :  { %v325_v43 = vadd.f32 1e-05, %v317_v37  ;;  %v327_v46 = vadd.f32 1e-05, %v319_v40  ;;  %v4532_v53 = vshrl.u32 %v339_v48, 7  ;;  %v323_v63 = vsub.f32 %v4506_v20, %v275_v23  ;;  %v575_v40 = vld [vmem:[#allocation9 + $0x588] sm:$0xff] }
 0x12b   :  { %v318_v47 = vsub.f32 %v310_v41, %v314_v42  ;;  %v312_v49 = vmul.f32 0.25, %v308_v45  ;;  %v316_v50 = vmul.f32 %v276_v44, %v276_v44  ;;  %v322_v6 = vsub.f32 %v4516_v27, %v274_v35  ;;  %v579_v41 = vld [vmem:[#allocation9 + $0x5a8] sm:$0xff] }
 0x12c   :  { %4241 = vrsqrt.f32 %v325_v43  ;;  %v4535_v55 = vsub.s32 0, %v4532_v53  ;;  %v4538_v57 = vsub.s32 2, %v4532_v53  ;;  %v4541_v58 = vsub.s32 1, %v4532_v53  ;;  %v439_v42 = vld [vmem:[#allocation9 + $0x148] sm:$0xff] }
 0x12d   :  { %4243 = vrsqrt.f32 %v327_v46  ;;  %v326_v51 = vadd.f32 1e-05, %v318_v47  ;;  %v320_v52 = vsub.f32 %v312_v49, %v316_v50  ;;  %v4548_v3 = vsub.s32 3, %v4532_v53  ;;  %v443_v43 = vld [vmem:[#allocation9 + $0x168] sm:$0xff] }
 0x12e   :  { %v342_v61 = vrot.slane %v337_v56, %v4535_v55  ;;  %v350_v0 = vrot.slane %v337_v56, %v4538_v57  ;;  %v369_v4 = vrot.slane %v364_v59, %v4535_v55  ;;  %v346_v7 = vrot.slane %v337_v56, %v4541_v58  ;;  %v567_v49 = vld [vmem:[#allocation9 + $0x548] sm:$0xff] }
 0x12f   :  { %4245 = vrsqrt.f32 %v326_v51  ;;  %v328_v54 = vadd.f32 1e-05, %v320_v52  ;;  %v373_v20 = vrot.slane %v364_v59, %v4541_v58  ;;  %v377_v14 = vrot.slane %v364_v59, %v4538_v57  ;;  %v571_v50 = vld [vmem:[#allocation9 + $0x568] sm:$0xff] }
 0x130   :  { %v324_v18 = vsub.f32 %v4518_v28, %v276_v44  ;;  %v354_v21 = vrot.slane %v337_v56, %v4548_v3  ;;  %v381_v27 = vrot.slane %v364_v59, %v4548_v3  ;;  %v3683_v39 = vcombine.high %v447_v33, %v451_v34  ;;  %v431_v51 = vld [vmem:[#allocation9 + $0x108] sm:$0xff] }
 0x131   :  { %4247 = vrsqrt.f32 %v328_v54  ;;  %v3682_v46 = vcombine.low %v447_v33, %v451_v34  ;;  %v3811_v47 = vcombine.high %v575_v40, %v579_v41  ;;  %v3675_v48 = vcombine.high %v439_v42, %v443_v43  ;;  %v435_v52 = vld [vmem:[#allocation9 + $0x128] sm:$0xff] }
 0x132   :  { %v3810_v11 = vcombine.low %v575_v40, %v579_v41  ;;  %v3674_v12 = vcombine.low %v439_v42, %v443_v43  ;;  %v3667_v54 = vcombine.high %v431_v51, %v435_v52  ;;  %v559_v56 = vld [vmem:[#allocation9 + $0x508] sm:$0xff] }
 0x133   :  { %v563_v59 = vld [vmem:[#allocation9 + $0x528] sm:$0xff] }
 0x134   :  { %v3795_v13 = vcombine.high %v559_v56, %v563_v59  ;;  %v519_v33 = vld [vmem:[#allocation9 + $0x3c8] sm:$0xff] }
 0x135   :  { %v523_v34 = vld [vmem:[#allocation9 + $0x3e8] sm:$0xff] }
 0x136   :  { %v647_v40 = vld [vmem:[#allocation9 + $0x7c8] sm:$0xff] }
 0x137   :  { %v651_v41 = vld [vmem:[#allocation9 + $0x7e8] sm:$0xff] }
 0x138   :  { %v511_v42 = vld [vmem:[#allocation9 + $0x388] sm:$0xff] }
 0x139   :  { %v4242_v62 = vpop.eup %4241  ;;  %v515_v43 = vld [vmem:[#allocation9 + $0x3a8] sm:$0xff] }
 0x13a   :  { %v4244_v1 = vpop.eup %4243  ;;  %v333_v2 = vmul.f32 %v4242_v62, %v321_v60  ;;  %v423_v60 = vld [vmem:[#allocation9 + $0xc8] sm:$0xff]  ;;  %v3802_v62 = vcombine.low %v567_v49, %v571_v50 }
 0x13b   :  { %v335_v5 = vmul.f32 %v4244_v1, %v323_v63  ;;  %v3666_v63 = vcombine.low %v431_v51, %v435_v52  ;;  %v415_v1 = vld [vmem:[#allocation9 + $0x88] sm:$0xff] }
 0x13c   :  { %v4246_v19 = vpop.eup %4245  ;;  %v359_v8 = vmul.f32 %v342_v61, %v333_v2  ;;  %v427_v61 = vld [vmem:[#allocation9 + $0xe8] sm:$0xff] }
 0x13d   :  { %v361_v9 = vmul.f32 %v350_v0, %v335_v5  ;;  %v334_v10 = vmul.f32 %v4246_v19, %v322_v6  ;;  %v3659_v15 = vcombine.high %v423_v60, %v427_v61  ;;  %v555_v0 = vld [vmem:[#allocation9 + $0x4e8] sm:$0xff]  ;;  %v3658_v5 = vcombine.low %v423_v60, %v427_v61 }
 0x13e   :  { %v386_v22 = vadd.f32 %v369_v4, %v359_v8  ;;  %v4248_v23 = vpop.eup %4247  ;;  %v419_v2 = vld [vmem:[#allocation9 + $0xa8] sm:$0xff]  ;;  %v3794_v4 = vcombine.low %v559_v56, %v563_v59 }
 0x13f   :  { %v360_v24 = vmul.f32 %v346_v7, %v334_v10  ;;  %v336_v25 = vmul.f32 %v4248_v23, %v324_v18  ;;  %v388_v29 = vadd.f32 %v377_v14, %v361_v9  ;;  %v3651_v7 = vcombine.high %v415_v1, %v419_v2  ;;  %v543_v19 = vld [vmem:[#allocation9 + $0x488] sm:$0xff] }
 0x140   :  { %v390_v31 = vmax.f32 %v386_v22, 0.0  ;;  %v547_v8 = vld [vmem:[#allocation9 + $0x4a8] sm:$0xff]  ;;  %v3650_v14 = vcombine.low %v415_v1, %v419_v2 }
 0x141   :  { %v387_v26 = vadd.f32 %v373_v20, %v360_v24  ;;  %v362_v30 = vmul.f32 %v354_v21, %v336_v25  ;;  %v392_v37 = vmax.f32 %v388_v29, 0.0  ;;  %v407_v9 = vld [vmem:[#allocation9 + $0x48] sm:$0xff]  ;;  %v3779_v18 = vcombine.high %v543_v19, %v547_v8 }
 0x142   :  { %v4560_v38 = vpack.c.bf16 %v390_v31, %v390_v31  ;;  %v411_v10 = vld [vmem:[#allocation9 + $0x68] sm:$0xff] }
 0x143   :  { %v391_v32 = vmax.f32 %v387_v26, 0.0  ;;  %v389_v35 = vadd.f32 %v381_v27, %v362_v30  ;;  %v4566_v45 = vpack.c.bf16 %v392_v37, %v392_v37  ;;  %v3643_v21 = vcombine.high %v407_v9, %v411_v10  ;;  %v535_v22 = vld [vmem:[#allocation9 + $0x448] sm:$0xff] }
 0x144   :  { %v539_v23 = vld [vmem:[#allocation9 + $0x468] sm:$0xff]  ;;  %v3778_v27 = vcombine.low %v543_v19, %v547_v8  ;;  %v3642_v26 = vcombine.low %v407_v9, %v411_v10 }
 0x145   :  { %v4558_v36 = vpack.c.bf16 %v391_v32, %v391_v32  ;;  %v393_v28 = vmax.f32 %v389_v35, 0.0  ;;  %v399_v24 = vld [vmem:[#allocation9 + $0x8] sm:$0xff]  ;;  %v3771_v29 = vcombine.high %v535_v22, %v539_v23  ;;  %v3770_v35 = vcombine.low %v535_v22, %v539_v23 }
 0x146   :  { %v403_v25 = vld [vmem:[#allocation9 + $0x28] sm:$0xff] }
 0x147   :  { %1966 = vmatprep.mubr.bf16.mxu0 %v4558_v36  ;;  %v4563_v44 = vpack.c.bf16 %v393_v28, %v393_v28  ;;  %v3635_v30 = vcombine.high %v399_v24, %v403_v25  ;;  %v527_v31 = vld [vmem:[#allocation9 + $0x408] sm:$0xff]  ;;  %v3634_v37 = vcombine.low %v399_v24, %v403_v25 }
 0x148   :  { %1967 = vmatmul.mubr.bf16.vlgmr.msra.gmra.mxu0 %v4560_v38  ;;  %v531_v32 = vld [vmem:[#allocation9 + $0x428] sm:$0xff] }
 0x149   :  { %2017 = vmatpush1.bf16.msra.mxu0 %v3690_v16  ;;  %2048 = vmatprep.mubr.bf16.mxu0 %v4558_v36  ;;  %v3803_v16 = vcombine.high %v567_v49, %v571_v50  ;;  %v3763_v28 = vcombine.high %v527_v31, %v531_v32  ;;  %v3747_v49 = vcombine.high %v511_v42, %v515_v43  ;;  %v639_v50 = vld [vmem:[#allocation9 + $0x788] sm:$0xff] }
 0x14a   :  { %2007 = vmatprep.mubr.bf16.mxu1 %v4563_v44  ;;  %2018 = vmatprep.subr.bf16.mxu0 %v3683_v39  ;;  %v3755_v39 = vcombine.high %v519_v33, %v523_v34  ;;  %v643_v51 = vld [vmem:[#allocation9 + $0x7a8] sm:$0xff] }
 0x14b   :  { %2008 = vmatmul.mubr.bf16.vlgmr.msra.gmra.mxu1 %v4566_v45  ;;  %v503_v52 = vld [vmem:[#allocation9 + $0x348] sm:$0xff] }
 0x14c   :  { %2058 = vmatpush1.bf16.msra.mxu1 %v3818_v17  ;;  %2089 = vmatprep.mubr.bf16.mxu1 %v4563_v44  ;;  %v551_v17 = vld [vmem:[#allocation9 + $0x4c8] sm:$0xff] }
 0x14d   :  { %2059 = vmatprep.subr.bf16.mxu1 %v3811_v47  ;;  %2019 = vmatpush1.bf16.msra.mxu0 %v3682_v46  ;;  %v3787_v6 = vcombine.high %v551_v17, %v555_v0  ;;  %v3786_v20 = vcombine.low %v551_v17, %v555_v0  ;;  %v3762_v46 = vcombine.low %v527_v31, %v531_v32  ;;  %v631_v59 = vld [vmem:[#allocation9 + $0x748] sm:$0xff] }
 0x14e   :  { %2020 = vmatprep.subr.bf16.mxu0 %v3675_v48  ;;  %v3754_v47 = vcombine.low %v519_v33, %v523_v34  ;;  %v3883_v48 = vcombine.high %v647_v40, %v651_v41  ;;  %v635_v60 = vld [vmem:[#allocation9 + $0x768] sm:$0xff] }
 0x14f   :  { %v495_v61 = vld [vmem:[#allocation9 + $0x308] sm:$0xff] }
 0x150   :  { %2060 = vmatpush1.bf16.msra.mxu1 %v3810_v11  ;;  %v507_v11 = vld [vmem:[#allocation9 + $0x368] sm:$0xff] }
 0x151   :  { %2061 = vmatprep.subr.bf16.mxu1 %v3803_v16  ;;  %2021 = vmatpush1.bf16.msra.mxu0 %v3674_v12  ;;  %v3882_v12 = vcombine.low %v647_v40, %v651_v41  ;;  %v3746_v16 = vcombine.low %v511_v42, %v515_v43  ;;  %v3739_v56 = vcombine.high %v503_v52, %v507_v11  ;;  %v623_v0 = vld [vmem:[#allocation9 + $0x708] sm:$0xff]  ;;  %v456_v43 = vld [vmem:[#allocation9 + $0x1d0] sm:$0xff] }
 0x152   :  { %2022 = vmatprep.subr.bf16.mxu0 %v3667_v54  ;;  %v3875_v54 = vcombine.high %v639_v50, %v643_v51  ;;  %v627_v1 = vld [vmem:[#allocation9 + $0x728] sm:$0xff] }
 0x153   :  { %v487_v2 = vld [vmem:[#allocation9 + $0x2c8] sm:$0xff] }
 0x154   :  { %2062 = vmatpush1.bf16.msra.mxu1 %v3802_v62  ;;  %v499_v62 = vld [vmem:[#allocation9 + $0x328] sm:$0xff] }
 0x155   :  { %2063 = vmatprep.subr.bf16.mxu1 %v3795_v13  ;;  %2023 = vmatpush1.bf16.msra.mxu0 %v3666_v63  ;;  %v3874_v63 = vcombine.low %v639_v50, %v643_v51  ;;  %v3738_v13 = vcombine.low %v503_v52, %v507_v11  ;;  %v3731_v17 = vcombine.high %v495_v61, %v499_v62  ;;  %v615_v8 = vld [vmem:[#allocation9 + $0x6c8] sm:$0xff]  ;;  %v584_v51 = vld [vmem:[#allocation9 + $0x5d0] sm:$0xff] }
 0x156   :  { %2024 = vmatprep.subr.bf16.mxu0 %v3659_v15  ;;  %v3867_v15 = vcombine.high %v631_v59, %v635_v60  ;;  %v619_v9 = vld [vmem:[#allocation9 + $0x6e8] sm:$0xff]  ;;  %v588_v52 = vld [vmem:[#allocation9 + $0x5f0] sm:$0xff] }
 0x157   :  { %v479_v10 = vld [vmem:[#allocation9 + $0x288] sm:$0xff]  ;;  %v448_v11 = vld [vmem:[#allocation9 + $0x190] sm:$0xff] }
 0x158   :  { %2064 = vmatpush1.bf16.msra.mxu1 %v3794_v4  ;;  %v491_v4 = vld [vmem:[#allocation9 + $0x2e8] sm:$0xff] }
 0x159   :  { %2065 = vmatprep.subr.bf16.mxu1 %v3787_v6  ;;  %2025 = vmatpush1.bf16.msra.mxu0 %v3658_v5  ;;  %v3866_v5 = vcombine.low %v631_v59, %v635_v60  ;;  %v3730_v6 = vcombine.low %v495_v61, %v499_v62  ;;  %v3723_v19 = vcombine.high %v487_v2, %v491_v4  ;;  %v607_v23 = vld [vmem:[#allocation9 + $0x688] sm:$0xff]  ;;  %v576_v60 = vld [vmem:[#allocation9 + $0x590] sm:$0xff] }
 0x15a   :  { %2026 = vmatprep.subr.bf16.mxu0 %v3651_v7  ;;  %v3859_v7 = vcombine.high %v623_v0, %v627_v1  ;;  %v611_v24 = vld [vmem:[#allocation9 + $0x6a8] sm:$0xff]  ;;  %v580_v61 = vld [vmem:[#allocation9 + $0x5b0] sm:$0xff] }
 0x15b   :  { %v471_v25 = vld [vmem:[#allocation9 + $0x248] sm:$0xff]  ;;  %v440_v62 = vld [vmem:[#allocation9 + $0x150] sm:$0xff] }
 0x15c   :  { %2066 = vmatpush1.bf16.msra.mxu1 %v3786_v20  ;;  %v483_v20 = vld [vmem:[#allocation9 + $0x2a8] sm:$0xff] }
 0x15d   :  { %2067 = vmatprep.subr.bf16.mxu1 %v3779_v18  ;;  %2027 = vmatpush1.bf16.msra.mxu0 %v3650_v14  ;;  %v3858_v14 = vcombine.low %v623_v0, %v627_v1  ;;  %v3722_v18 = vcombine.low %v487_v2, %v491_v4  ;;  %v3715_v22 = vcombine.high %v479_v10, %v483_v20  ;;  %v599_v32 = vld [vmem:[#allocation9 + $0x648] sm:$0xff]  ;;  %v568_v1 = vld [vmem:[#allocation9 + $0x550] sm:$0xff] }
 0x15e   :  { %2028 = vmatprep.subr.bf16.mxu0 %v3643_v21  ;;  %v3851_v21 = vcombine.high %v615_v8, %v619_v9  ;;  %v603_v33 = vld [vmem:[#allocation9 + $0x668] sm:$0xff]  ;;  %v572_v2 = vld [vmem:[#allocation9 + $0x570] sm:$0xff] }
 0x15f   :  { %v463_v34 = vld [vmem:[#allocation9 + $0x208] sm:$0xff]  ;;  %v432_v4 = vld [vmem:[#allocation9 + $0x110] sm:$0xff] }
 0x160   :  { %2068 = vmatpush1.bf16.msra.mxu1 %v3778_v27  ;;  %v475_v27 = vld [vmem:[#allocation9 + $0x268] sm:$0xff] }
 0x161   :  { %2069 = vmatprep.subr.bf16.mxu1 %v3771_v29  ;;  %2029 = vmatpush1.bf16.msra.mxu0 %v3642_v26  ;;  %v3850_v26 = vcombine.low %v615_v8, %v619_v9  ;;  %v3714_v29 = vcombine.low %v479_v10, %v483_v20  ;;  %v3707_v31 = vcombine.high %v471_v25, %v475_v27  ;;  %v591_v41 = vld [vmem:[#allocation9 + $0x608] sm:$0xff]  ;;  %v560_v9 = vld [vmem:[#allocation9 + $0x510] sm:$0xff] }
 0x162   :  { %2030 = vmatprep.subr.bf16.mxu0 %v3635_v30  ;;  %v3843_v30 = vcombine.high %v607_v23, %v611_v24  ;;  %v595_v42 = vld [vmem:[#allocation9 + $0x628] sm:$0xff]  ;;  %v564_v10 = vld [vmem:[#allocation9 + $0x530] sm:$0xff] }
 0x163   :  { %v424_v20 = vld [vmem:[#allocation9 + $0xd0] sm:$0xff] }
 0x164   :  { %2070 = vmatpush1.bf16.msra.mxu1 %v3770_v35  ;;  %v467_v35 = vld [vmem:[#allocation9 + $0x228] sm:$0xff] }
 0x165   :  { %2071 = vmatprep.subr.bf16.mxu1 %v3763_v28  ;;  %2031 = vmatpush1.bf16.msra.mxu0 %v3634_v37  ;;  %v3842_v37 = vcombine.low %v607_v23, %v611_v24  ;;  %v3706_v28 = vcombine.low %v471_v25, %v475_v27  ;;  %v3699_v40 = vcombine.high %v463_v34, %v467_v35  ;;  %v552_v24 = vld [vmem:[#allocation9 + $0x4d0] sm:$0xff] }
 0x166   :  { %2032 = vmatprep.subr.bf16.mxu0 %v3755_v39  ;;  %v3835_v39 = vcombine.high %v599_v32, %v603_v33  ;;  %v556_v25 = vld [vmem:[#allocation9 + $0x4f0] sm:$0xff] }
 0x167   :  { %v416_v27 = vld [vmem:[#allocation9 + $0x90] sm:$0xff] }
 0x168   :  { %2072 = vmatpush1.bf16.msra.mxu1 %v3762_v46  ;;  %v460_v46 = vld [vmem:[#allocation9 + $0x1f0] sm:$0xff] }
 0x169   :  { %2073 = vmatprep.subr.bf16.mxu1 %v3883_v48  ;;  %2033 = vmatpush2.bf16.msra.mxu0 %v3754_v47  ;;  %v3834_v47 = vcombine.low %v599_v32, %v603_v33  ;;  %v3698_v48 = vcombine.low %v463_v34, %v467_v35  ;;  %v3693_v50 = vcombine.high %v456_v43, %v460_v46  ;;  %v544_v33 = vld [vmem:[#allocation9 + $0x490] sm:$0xff] }
 0x16a   :  { %2034 = vmatprep.subr.bf16.mxu0 %v3747_v49  ;;  %v3827_v49 = vcombine.high %v591_v41, %v595_v42  ;;  %v548_v34 = vld [vmem:[#allocation9 + $0x4b0] sm:$0xff] }
 0x16b   :  { %v408_v35 = vld [vmem:[#allocation9 + $0x50] sm:$0xff] }
 0x16c   :  { %2074 = vmatpush2.bf16.msra.mxu1 %v3882_v12  ;;  %v452_v12 = vld [vmem:[#allocation9 + $0x1b0] sm:$0xff] }
 0x16d   :  { %2075 = vmatprep.subr.bf16.mxu1 %v3875_v54  ;;  %2035 = vmatpush2.bf16.msra.mxu0 %v3746_v16  ;;  %v3826_v16 = vcombine.low %v591_v41, %v595_v42  ;;  %v3692_v54 = vcombine.low %v456_v43, %v460_v46  ;;  %v3685_v59 = vcombine.high %v448_v11, %v452_v12  ;;  %v536_v42 = vld [vmem:[#allocation9 + $0x450] sm:$0xff] }
 0x16e   :  { %2036 = vmatprep.subr.bf16.mxu0 %v3739_v56  ;;  %v3821_v56 = vcombine.high %v584_v51, %v588_v52  ;;  %v540_v43 = vld [vmem:[#allocation9 + $0x470] sm:$0xff] }
 0x16f   :  { %v400_v46 = vld [vmem:[#allocation9 + $0x10] sm:$0xff] }
 0x170   :  { %2076 = vmatpush2.bf16.msra.mxu1 %v3874_v63  ;;  %v444_v63 = vld [vmem:[#allocation9 + $0x170] sm:$0xff] }
 0x171   :  { %2077 = vmatprep.subr.bf16.mxu1 %v3867_v15  ;;  %2037 = vmatpush2.bf16.msra.mxu0 %v3738_v13  ;;  %v3820_v13 = vcombine.low %v584_v51, %v588_v52  ;;  %v3684_v15 = vcombine.low %v448_v11, %v452_v12  ;;  %v3677_v0 = vcombine.high %v440_v62, %v444_v63  ;;  %v528_v52 = vld [vmem:[#allocation9 + $0x410] sm:$0xff] }
 0x172   :  { %2038 = vmatprep.subr.bf16.mxu0 %v3731_v17  ;;  %v3813_v17 = vcombine.high %v576_v60, %v580_v61  ;;  %v532_v11 = vld [vmem:[#allocation9 + $0x430] sm:$0xff] }
 0x173   :  { %v520_v12 = vld [vmem:[#allocation9 + $0x3d0] sm:$0xff] }
 0x174   :  { %2078 = vmatpush2.bf16.msra.mxu1 %v3866_v5  ;;  %v436_v5 = vld [vmem:[#allocation9 + $0x130] sm:$0xff] }
 0x175   :  { %2079 = vmatprep.subr.bf16.mxu1 %v3859_v7  ;;  %2039 = vmatpush2.bf16.msra.mxu0 %v3730_v6  ;;  %v3812_v6 = vcombine.low %v576_v60, %v580_v61  ;;  %v3676_v7 = vcombine.low %v440_v62, %v444_v63  ;;  %v3669_v8 = vcombine.high %v432_v4, %v436_v5  ;;  %v648_v61 = vld [vmem:[#allocation9 + $0x7d0] sm:$0xff] }
 0x176   :  { %2040 = vmatprep.subr.bf16.mxu0 %v3723_v19  ;;  %v3805_v19 = vcombine.high %v568_v1, %v572_v2  ;;  %v652_v62 = vld [vmem:[#allocation9 + $0x7f0] sm:$0xff] }
 0x177   :  { %v512_v63 = vld [vmem:[#allocation9 + $0x390] sm:$0xff] }
 0x178   :  { %2080 = vmatpush2.bf16.msra.mxu1 %v3858_v14  ;;  %v428_v14 = vld [vmem:[#allocation9 + $0xf0] sm:$0xff] }
 0x179   :  { %2081 = vmatprep.subr.bf16.mxu1 %v3851_v21  ;;  %2041 = vmatpush2.bf16.msra.mxu0 %v3722_v18  ;;  %v3804_v18 = vcombine.low %v568_v1, %v572_v2  ;;  %v3668_v21 = vcombine.low %v432_v4, %v436_v5  ;;  %v3661_v23 = vcombine.high %v424_v20, %v428_v14  ;;  %v640_v2 = vld [vmem:[#allocation9 + $0x790] sm:$0xff] }
 0x17a   :  { %2042 = vmatprep.subr.bf16.mxu0 %v3715_v22  ;;  %v3797_v22 = vcombine.high %v560_v9, %v564_v10  ;;  %v644_v4 = vld [vmem:[#allocation9 + $0x7b0] sm:$0xff] }
 0x17b   :  { %v504_v5 = vld [vmem:[#allocation9 + $0x350] sm:$0xff] }
 0x17c   :  { %2082 = vmatpush2.bf16.msra.mxu1 %v3850_v26  ;;  %v420_v26 = vld [vmem:[#allocation9 + $0xb0] sm:$0xff] }
 0x17d   :  { %2083 = vmatprep.subr.bf16.mxu1 %v3843_v30  ;;  %2043 = vmatpush2.bf16.msra.mxu0 %v3714_v29  ;;  %v3796_v29 = vcombine.low %v560_v9, %v564_v10  ;;  %v3660_v30 = vcombine.low %v424_v20, %v428_v14  ;;  %v3653_v32 = vcombine.high %v416_v27, %v420_v26  ;;  %v632_v10 = vld [vmem:[#allocation9 + $0x750] sm:$0xff] }
 0x17e   :  { %2044 = vmatprep.subr.bf16.mxu0 %v3707_v31  ;;  %v3789_v31 = vcombine.high %v552_v24, %v556_v25  ;;  %v636_v20 = vld [vmem:[#allocation9 + $0x770] sm:$0xff] }
 0x17f   :  { %v496_v14 = vld [vmem:[#allocation9 + $0x310] sm:$0xff] }
 0x180   :  { %2084 = vmatpush2.bf16.msra.mxu1 %v3842_v37  ;;  %v412_v37 = vld [vmem:[#allocation9 + $0x70] sm:$0xff] }
 0x181   :  { %2085 = vmatprep.subr.bf16.mxu1 %v3835_v39  ;;  %2045 = vmatpush2.bf16.msra.mxu0 %v3706_v28  ;;  %v3788_v28 = vcombine.low %v552_v24, %v556_v25  ;;  %v3652_v39 = vcombine.low %v416_v27, %v420_v26  ;;  %v3645_v41 = vcombine.high %v408_v35, %v412_v37  ;;  %v624_v25 = vld [vmem:[#allocation9 + $0x710] sm:$0xff] }
 0x182   :  { %2046 = vmatprep.subr.bf16.mxu0 %v3699_v40  ;;  %v3781_v40 = vcombine.high %v544_v33, %v548_v34  ;;  %v628_v27 = vld [vmem:[#allocation9 + $0x730] sm:$0xff] }
 0x183   :  { %v488_v26 = vld [vmem:[#allocation9 + $0x2d0] sm:$0xff] }
 0x184   :  { %2086 = vmatpush2.bf16.msra.mxu1 %v3834_v47  ;;  %v404_v47 = vld [vmem:[#allocation9 + $0x30] sm:$0xff] }
 0x185   :  { %2087 = vmatprep.subr.bf16.mxu1 %v3827_v49  ;;  %2047 = vmatpush2.bf16.msra.mxu0 %v3698_v48  ;;  %v3780_v48 = vcombine.low %v544_v33, %v548_v34  ;;  %v3644_v49 = vcombine.low %v408_v35, %v412_v37  ;;  %v3637_v51 = vcombine.high %v400_v46, %v404_v47  ;;  %v616_v34 = vld [vmem:[#allocation9 + $0x6d0] sm:$0xff] }
 0x186   :  { %2098 = vmatprep.subr.bf16.mxu0 %v3693_v50  ;;  %v3773_v50 = vcombine.high %v536_v42, %v540_v43  ;;  %v620_v35 = vld [vmem:[#allocation9 + $0x6f0] sm:$0xff] }
 0x187   :  { %v480_v37 = vld [vmem:[#allocation9 + $0x290] sm:$0xff] }
 0x188   :  { %2088 = vmatpush2.bf16.msra.mxu1 %v3826_v16  ;;  %2049 = vmatmul.mubr.bf16.vlgmr.msra.gmra.mxu0 %v4560_v38  ;;  %v524_v16 = vld [vmem:[#allocation9 + $0x3f0] sm:$0xff] }
 0x189   :  { %2139 = vmatprep.subr.bf16.mxu1 %v3821_v56  ;;  %2099 = vmatpush1.bf16.msra.mxu0 %v3692_v54  ;;  %v3772_v54 = vcombine.low %v536_v42, %v540_v43  ;;  %v3636_v56 = vcombine.low %v400_v46, %v404_v47  ;;  %v3757_v60 = vcombine.high %v520_v12, %v524_v16  ;;  %v608_v43 = vld [vmem:[#allocation9 + $0x690] sm:$0xff] }
 0x18a   :  { %2130 = vmatprep.mubr.bf16.mxu0 %v4558_v36  ;;  %2100 = vmatprep.subr.bf16.mxu0 %v3685_v59  ;;  %v3765_v59 = vcombine.high %v528_v52, %v532_v11  ;;  %v612_v46 = vld [vmem:[#allocation9 + $0x6b0] sm:$0xff] }
 0x18b   :  { %2090 = vmatmul.mubr.bf16.vlgmr.msra.gmra.mxu1 %v4566_v45  ;;  %v472_v47 = vld [vmem:[#allocation9 + $0x250] sm:$0xff] }
 0x18c   :  { %2140 = vmatpush1.bf16.msra.mxu1 %v3820_v13  ;;  %2171 = vmatprep.mubr.bf16.mxu1 %v4563_v44  ;;  %v516_v13 = vld [vmem:[#allocation9 + $0x3b0] sm:$0xff] }
 0x18d   :  { %2141 = vmatprep.subr.bf16.mxu1 %v3813_v17  ;;  %2101 = vmatpush1.bf16.msra.mxu0 %v3684_v15  ;;  %v3764_v15 = vcombine.low %v528_v52, %v532_v11  ;;  %v3756_v17 = vcombine.low %v520_v12, %v524_v16  ;;  %v3749_v1 = vcombine.high %v512_v63, %v516_v13  ;;  %v600_v11 = vld [vmem:[#allocation9 + $0x650] sm:$0xff] }
 0x18e   :  { %2102 = vmatprep.subr.bf16.mxu0 %v3677_v0  ;;  %v3885_v0 = vcombine.high %v648_v61, %v652_v62  ;;  %v604_v12 = vld [vmem:[#allocation9 + $0x670] sm:$0xff] }
 0x18f   :  { %v464_v16 = vld [vmem:[#allocation9 + $0x210] sm:$0xff] }
 0x190   :  { %2142 = vmatpush1.bf16.msra.mxu1 %v3812_v6  ;;  %v508_v6 = vld [vmem:[#allocation9 + $0x370] sm:$0xff] }
 0x191   :  { %2143 = vmatprep.subr.bf16.mxu1 %v3805_v19  ;;  %2103 = vmatpush1.bf16.msra.mxu0 %v3676_v7  ;;  %v3884_v7 = vcombine.low %v648_v61, %v652_v62  ;;  %v3748_v19 = vcombine.low %v512_v63, %v516_v13  ;;  %v3741_v9 = vcombine.high %v504_v5, %v508_v6  ;;  %v592_v62 = vld [vmem:[#allocation9 + $0x610] sm:$0xff]  ;;  %v457_v13 = vld [vmem:[#allocation9 + $0x1d8] sm:$0xff] }
 0x192   :  { %2104 = vmatprep.subr.bf16.mxu0 %v3669_v8  ;;  %v3877_v8 = vcombine.high %v640_v2, %v644_v4  ;;  %v596_v63 = vld [vmem:[#allocation9 + $0x630] sm:$0xff] }
 0x194   :  { %2144 = vmatpush1.bf16.msra.mxu1 %v3804_v18  ;;  %v500_v18 = vld [vmem:[#allocation9 + $0x330] sm:$0xff] }
 0x195   :  { %2145 = vmatprep.subr.bf16.mxu1 %v3797_v22  ;;  %2105 = vmatpush1.bf16.msra.mxu0 %v3668_v21  ;;  %v3876_v21 = vcombine.low %v640_v2, %v644_v4  ;;  %v3740_v22 = vcombine.low %v504_v5, %v508_v6  ;;  %v3733_v24 = vcombine.high %v496_v14, %v500_v18  ;;  %v585_v4 = vld [vmem:[#allocation9 + $0x5d8] sm:$0xff] }
 0x196   :  { %2106 = vmatprep.subr.bf16.mxu0 %v3661_v23  ;;  %v3869_v23 = vcombine.high %v632_v10, %v636_v20  ;;  %v589_v5 = vld [vmem:[#allocation9 + $0x5f8] sm:$0xff] }
 0x197   :  { %v449_v6 = vld [vmem:[#allocation9 + $0x198] sm:$0xff] }
 0x198   :  { %2146 = vmatpush1.bf16.msra.mxu1 %v3796_v29  ;;  %v492_v29 = vld [vmem:[#allocation9 + $0x2f0] sm:$0xff] }
 0x199   :  { %2147 = vmatprep.subr.bf16.mxu1 %v3789_v31  ;;  %2107 = vmatpush1.bf16.msra.mxu0 %v3660_v30  ;;  %v3868_v30 = vcombine.low %v632_v10, %v636_v20  ;;  %v3732_v31 = vcombine.low %v496_v14, %v500_v18  ;;  %v3725_v33 = vcombine.high %v488_v26, %v492_v29  ;;  %v577_v20 = vld [vmem:[#allocation9 + $0x598] sm:$0xff] }
 0x19a   :  { %2108 = vmatprep.subr.bf16.mxu0 %v3653_v32  ;;  %v3861_v32 = vcombine.high %v624_v25, %v628_v27  ;;  %v581_v14 = vld [vmem:[#allocation9 + $0x5b8] sm:$0xff] }
 0x19b   :  { %v441_v18 = vld [vmem:[#allocation9 + $0x158] sm:$0xff] }
 0x19c   :  { %2148 = vmatpush1.bf16.msra.mxu1 %v3788_v28  ;;  %v484_v28 = vld [vmem:[#allocation9 + $0x2b0] sm:$0xff] }
 0x19d   :  { %2149 = vmatprep.subr.bf16.mxu1 %v3781_v40  ;;  %2109 = vmatpush1.bf16.msra.mxu0 %v3652_v39  ;;  %v3860_v39 = vcombine.low %v624_v25, %v628_v27  ;;  %v3724_v40 = vcombine.low %v488_v26, %v492_v29  ;;  %v3717_v42 = vcombine.high %v480_v37, %v484_v28  ;;  %v569_v27 = vld [vmem:[#allocation9 + $0x558] sm:$0xff] }
 0x19e   :  { %2110 = vmatprep.subr.bf16.mxu0 %v3645_v41  ;;  %v3853_v41 = vcombine.high %v616_v34, %v620_v35  ;;  %v573_v26 = vld [vmem:[#allocation9 + $0x578] sm:$0xff] }
 0x19f   :  { %v433_v29 = vld [vmem:[#allocation9 + $0x118] sm:$0xff] }
 0x1a0   :  { %2150 = vmatpush1.bf16.msra.mxu1 %v3780_v48  ;;  %v476_v48 = vld [vmem:[#allocation9 + $0x270] sm:$0xff] }
 0x1a1   :  { %2151 = vmatprep.subr.bf16.mxu1 %v3773_v50  ;;  %2111 = vmatpush1.bf16.msra.mxu0 %v3644_v49  ;;  %v3852_v49 = vcombine.low %v616_v34, %v620_v35  ;;  %v3716_v50 = vcombine.low %v480_v37, %v484_v28  ;;  %v3709_v52 = vcombine.high %v472_v47, %v476_v48  ;;  %v561_v35 = vld [vmem:[#allocation9 + $0x518] sm:$0xff] }
 0x1a2   :  { %2112 = vmatprep.subr.bf16.mxu0 %v3637_v51  ;;  %v3845_v51 = vcombine.high %v608_v43, %v612_v46  ;;  %v425_v37 = vld [vmem:[#allocation9 + $0xd8] sm:$0xff] }
 0x1a3   :  { %v429_v28 = vld [vmem:[#allocation9 + $0xf8] sm:$0xff] }
 0x1a4   :  { %2152 = vmatpush1.bf16.msra.mxu1 %v3772_v54  ;;  %v468_v54 = vld [vmem:[#allocation9 + $0x230] sm:$0xff] }
 0x1a5   :  { %2153 = vmatprep.subr.bf16.mxu1 %v3765_v59  ;;  %2113 = vmatpush1.bf16.msra.mxu0 %v3636_v56  ;;  %v3844_v56 = vcombine.low %v608_v43, %v612_v46  ;;  %v3708_v59 = vcombine.low %v472_v47, %v476_v48  ;;  %v3701_v61 = vcombine.high %v464_v16, %v468_v54  ;;  %v557_v43 = vld [vmem:[#allocation9 + $0x4f8] sm:$0xff] }
 0x1a6   :  { %2114 = vmatprep.subr.bf16.mxu0 %v3757_v60  ;;  %v3837_v60 = vcombine.high %v600_v11, %v604_v12  ;;  %v417_v46 = vld [vmem:[#allocation9 + $0x98] sm:$0xff] }
 0x1a7   :  { %v421_v47 = vld [vmem:[#allocation9 + $0xb8] sm:$0xff] }
 0x1a8   :  { %2154 = vmatpush1.bf16.msra.mxu1 %v3764_v15  ;;  %v461_v15 = vld [vmem:[#allocation9 + $0x1f8] sm:$0xff] }
 0x1a9   :  { %2155 = vmatprep.subr.bf16.mxu1 %v3885_v0  ;;  %2115 = vmatpush2.bf16.msra.mxu0 %v3756_v17  ;;  %v3836_v17 = vcombine.low %v600_v11, %v604_v12  ;;  %v3700_v0 = vcombine.low %v464_v16, %v468_v54  ;;  %v3695_v2 = vcombine.high %v457_v13, %v461_v15  ;;  %v549_v11 = vld [vmem:[#allocation9 + $0x4b8] sm:$0xff] }
 0x1aa   :  { %2116 = vmatprep.subr.bf16.mxu0 %v3749_v1  ;;  %v3829_v1 = vcombine.high %v592_v62, %v596_v63  ;;  %v409_v12 = vld [vmem:[#allocation9 + $0x58] sm:$0xff] }
 0x1ab   :  { %v413_v16 = vld [vmem:[#allocation9 + $0x78] sm:$0xff] }
 0x1ac   :  { %2156 = vmatpush2.bf16.msra.mxu1 %v3884_v7  ;;  %v453_v7 = vld [vmem:[#allocation9 + $0x1b8] sm:$0xff] }
 0x1ad   :  { %2157 = vmatprep.subr.bf16.mxu1 %v3877_v8  ;;  %2117 = vmatpush2.bf16.msra.mxu0 %v3748_v19  ;;  %v3828_v19 = vcombine.low %v592_v62, %v596_v63  ;;  %v3694_v8 = vcombine.low %v457_v13, %v461_v15  ;;  %v3687_v10 = vcombine.high %v449_v6, %v453_v7  ;;  %v541_v62 = vld [vmem:[#allocation9 + $0x478] sm:$0xff] }
 0x1ae   :  { %2118 = vmatprep.subr.bf16.mxu0 %v3741_v9  ;;  %v3823_v9 = vcombine.high %v585_v4, %v589_v5  ;;  %v401_v63 = vld [vmem:[#allocation9 + $0x18] sm:$0xff] }
 0x1af   :  { %v405_v13 = vld [vmem:[#allocation9 + $0x38] sm:$0xff] }
 0x1b0   :  { %2158 = vmatpush2.bf16.msra.mxu1 %v3876_v21  ;;  %v445_v21 = vld [vmem:[#allocation9 + $0x178] sm:$0xff] }
 0x1b1   :  { %2159 = vmatprep.subr.bf16.mxu1 %v3869_v23  ;;  %2119 = vmatpush2.bf16.msra.mxu0 %v3740_v22  ;;  %v3822_v22 = vcombine.low %v585_v4, %v589_v5  ;;  %v3686_v23 = vcombine.low %v449_v6, %v453_v7  ;;  %v3679_v25 = vcombine.high %v441_v18, %v445_v21  ;;  %v533_v4 = vld [vmem:[#allocation9 + $0x438] sm:$0xff] }
 0x1b2   :  { %2120 = vmatprep.subr.bf16.mxu0 %v3733_v24  ;;  %v3815_v24 = vcombine.high %v577_v20, %v581_v14  ;;  %v521_v5 = vld [vmem:[#allocation9 + $0x3d8] sm:$0xff] }
 0x1b3   :  { %v525_v6 = vld [vmem:[#allocation9 + $0x3f8] sm:$0xff] }
 0x1b4   :  { %2160 = vmatpush2.bf16.msra.mxu1 %v3868_v30  ;;  %v437_v30 = vld [vmem:[#allocation9 + $0x138] sm:$0xff] }
 0x1b5   :  { %2161 = vmatprep.subr.bf16.mxu1 %v3861_v32  ;;  %2121 = vmatpush2.bf16.msra.mxu0 %v3732_v31  ;;  %v3814_v31 = vcombine.low %v577_v20, %v581_v14  ;;  %v3678_v32 = vcombine.low %v441_v18, %v445_v21  ;;  %v3671_v34 = vcombine.high %v433_v29, %v437_v30  ;;  %v653_v20 = vld [vmem:[#allocation9 + $0x7f8] sm:$0xff] }
 0x1b6   :  { %2122 = vmatprep.subr.bf16.mxu0 %v3725_v33  ;;  %v3807_v33 = vcombine.high %v569_v27, %v573_v26  ;;  %v513_v14 = vld [vmem:[#allocation9 + $0x398] sm:$0xff] }
 0x1b7   :  { %v517_v18 = vld [vmem:[#allocation9 + $0x3b8] sm:$0xff] }
 0x1b8   :  { %2162 = vmatpush2.bf16.msra.mxu1 %v3860_v39  ;;  %v3806_v39 = vcombine.low %v569_v27, %v573_v26  ;;  %v645_v27 = vld [vmem:[#allocation9 + $0x7b8] sm:$0xff] }
 0x1b9   :  { %2163 = vmatprep.subr.bf16.mxu1 %v3853_v41  ;;  %2123 = vmatpush2.bf16.msra.mxu0 %v3724_v40  ;;  %v3670_v40 = vcombine.low %v433_v29, %v437_v30  ;;  %v505_v26 = vld [vmem:[#allocation9 + $0x358] sm:$0xff] }
 0x1ba   :  { %2124 = vmatprep.subr.bf16.mxu0 %v3717_v42  ;;  %v3663_v42 = vcombine.high %v425_v37, %v429_v28  ;;  %v509_v29 = vld [vmem:[#allocation9 + $0x378] sm:$0xff] }
 0x1bc   :  { %2164 = vmatpush2.bf16.msra.mxu1 %v3852_v49  ;;  %v3662_v49 = vcombine.low %v425_v37, %v429_v28  ;;  %v501_v37 = vld [vmem:[#allocation9 + $0x338] sm:$0xff] }
 0x1bd   :  { %2165 = vmatprep.subr.bf16.mxu1 %v3845_v51  ;;  %2125 = vmatpush2.bf16.msra.mxu0 %v3716_v50  ;;  %v3655_v51 = vcombine.high %v417_v46, %v421_v47 }
 0x1be   :  { %2126 = vmatprep.subr.bf16.mxu0 %v3709_v52  ;;  %v545_v52 = vld [vmem:[#allocation9 + $0x498] sm:$0xff] }
 0x1bf   :  { %v3782_v15 = vcombine.low %v545_v52, %v549_v11 }
 0x1c0   :  { %2166 = vmatpush2.bf16.msra.mxu1 %v3844_v56  ;;  %v3654_v56 = vcombine.low %v417_v46, %v421_v47  ;;  %v493_v46 = vld [vmem:[#allocation9 + $0x2f8] sm:$0xff] }
 0x1c1   :  { %2167 = vmatprep.subr.bf16.mxu1 %v3837_v60  ;;  %2127 = vmatpush2.bf16.msra.mxu0 %v3708_v59  ;;  %v3783_v59 = vcombine.high %v545_v52, %v549_v11  ;;  %v3647_v60 = vcombine.high %v409_v12, %v413_v16  ;;  %v621_v52 = vld [vmem:[#allocation9 + $0x6f8] sm:$0xff] }
 0x1c2   :  { %2128 = vmatprep.subr.bf16.mxu0 %v3701_v61  ;;  %v537_v61 = vld [vmem:[#allocation9 + $0x458] sm:$0xff] }
 0x1c3   :  { %v3774_v7 = vcombine.low %v537_v61, %v541_v62  ;;  %v481_v11 = vld [vmem:[#allocation9 + $0x298] sm:$0xff] }
 0x1c4   :  { %2168 = vmatpush2.bf16.msra.mxu1 %v3836_v17  ;;  %v3646_v17 = vcombine.low %v409_v12, %v413_v16  ;;  %v485_v12 = vld [vmem:[#allocation9 + $0x2b8] sm:$0xff] }
 0x1c5   :  { %2169 = vmatprep.subr.bf16.mxu1 %v3829_v1  ;;  %2129 = vmatpush2.bf16.msra.mxu0 %v3700_v0  ;;  %v3775_v0 = vcombine.high %v537_v61, %v541_v62  ;;  %v3639_v1 = vcombine.high %v401_v63, %v405_v13  ;;  %v613_v61 = vld [vmem:[#allocation9 + $0x6b8] sm:$0xff] }
 0x1c6   :  { %2180 = vmatprep.subr.bf16.mxu0 %v3695_v2  ;;  %v529_v2 = vld [vmem:[#allocation9 + $0x418] sm:$0xff] }
 0x1c7   :  { %v3766_v21 = vcombine.low %v529_v2, %v533_v4  ;;  %v473_v62 = vld [vmem:[#allocation9 + $0x258] sm:$0xff] }
 0x1c8   :  { %2170 = vmatpush2.bf16.msra.mxu1 %v3828_v19  ;;  %2131 = vmatmul.mubr.bf16.vlgmr.msra.gmra.mxu0 %v4560_v38  ;;  %v3638_v19 = vcombine.low %v401_v63, %v405_v13  ;;  %v477_v63 = vld [vmem:[#allocation9 + $0x278] sm:$0xff] }
 0x1c9   :  { %2221 = vmatprep.subr.bf16.mxu1 %v3823_v9  ;;  %2181 = vmatpush1.bf16.msra.mxu0 %v3694_v8  ;;  %v3767_v8 = vcombine.high %v529_v2, %v533_v4  ;;  %v3759_v9 = vcombine.high %v521_v5, %v525_v6  ;;  %v605_v2 = vld [vmem:[#allocation9 + $0x678] sm:$0xff] }
 0x1ca   :  { %2212 = vmatprep.mubr.bf16.mxu0 %v4558_v36  ;;  %2182 = vmatprep.subr.bf16.mxu0 %v3687_v10  ;;  %v565_v36 = vld [vmem:[#allocation9 + $0x538] sm:$0xff] }
 0x1cb   :  { %2172 = vmatmul.mubr.bf16.vlgmr.msra.gmra.mxu1 %v4566_v45  ;;  %v3799_v41 = vcombine.high %v561_v35, %v565_v36  ;;  %v3798_v48 = vcombine.low %v561_v35, %v565_v36  ;;  %v649_v10 = vld [vmem:[#allocation9 + $0x7d8] sm:$0xff] }
 0x1cc   :  { %2222 = vmatpush1.bf16.msra.mxu1 %v3822_v22  ;;  %2253 = vmatprep.mubr.bf16.mxu1 %v4563_v44  ;;  %v553_v44 = vld [vmem:[#allocation9 + $0x4d8] sm:$0xff]  ;;  %v3758_v22 = vcombine.low %v521_v5, %v525_v6  ;;  %v3886_v30 = vcombine.low %v649_v10, %v653_v20 }
 0x1cd   :  { %2223 = vmatprep.subr.bf16.mxu1 %v3815_v24  ;;  %2183 = vmatpush1.bf16.msra.mxu0 %v3686_v23  ;;  %v3791_v50 = vcombine.high %v553_v44, %v557_v43  ;;  %v3790_v54 = vcombine.low %v553_v44, %v557_v43  ;;  %v3887_v23 = vcombine.high %v649_v10, %v653_v20  ;;  %v637_v35 = vld [vmem:[#allocation9 + $0x778] sm:$0xff] }
 0x1ce   :  { %2184 = vmatprep.subr.bf16.mxu0 %v3679_v25  ;;  %v3751_v24 = vcombine.high %v513_v14, %v517_v18  ;;  %v641_v25 = vld [vmem:[#allocation9 + $0x798] sm:$0xff] }
 0x1cf   :  { %v497_v36 = vld [vmem:[#allocation9 + $0x318] sm:$0xff]  ;;  %v3878_v28 = vcombine.low %v641_v25, %v645_v27 }
 0x1d0   :  { %2224 = vmatpush1.bf16.msra.mxu1 %v3814_v31  ;;  %v3750_v31 = vcombine.low %v513_v14, %v517_v18  ;;  %v629_v44 = vld [vmem:[#allocation9 + $0x738] sm:$0xff] }
 0x1d1   :  { %2225 = vmatprep.subr.bf16.mxu1 %v3807_v33  ;;  %2185 = vmatpush1.bf16.msra.mxu0 %v3678_v32  ;;  %v3879_v32 = vcombine.high %v641_v25, %v645_v27  ;;  %v3743_v33 = vcombine.high %v505_v26, %v509_v29  ;;  %v489_v43 = vld [vmem:[#allocation9 + $0x2d8] sm:$0xff] }
 0x1d2   :  { %2186 = vmatprep.subr.bf16.mxu0 %v3671_v34  ;;  %v633_v34 = vld [vmem:[#allocation9 + $0x758] sm:$0xff] }
 0x1d3   :  { %v3870_v47 = vcombine.low %v633_v34, %v637_v35  ;;  %v465_v4 = vld [vmem:[#allocation9 + $0x218] sm:$0xff] }
 0x1d4   :  { %2226 = vmatpush1.bf16.msra.mxu1 %v3806_v39  ;;  %v3742_v39 = vcombine.low %v505_v26, %v509_v29  ;;  %v469_v5 = vld [vmem:[#allocation9 + $0x238] sm:$0xff]  ;;  %v4052_v26 = vld [vmem:[#allocation12 + $0x170] ss:$8 sps:$4 sm:$0xff]  }
 0x1d5   :  { %2227 = vmatprep.subr.bf16.mxu1 %v3799_v41  ;;  %2187 = vmatpush1.bf16.msra.mxu0 %v3670_v40  ;;  %v3871_v40 = vcombine.high %v633_v34, %v637_v35  ;;  %v3735_v41 = vcombine.high %v497_v36, %v501_v37  ;;  %v597_v10 = vld [vmem:[#allocation9 + $0x638] sm:$0xff]  ;;  %v3702_v14 = vcombine.low %v465_v4, %v469_v5 }
 0x1d6   :  { %2188 = vmatprep.subr.bf16.mxu0 %v3663_v42  ;;  %v625_v42 = vld [vmem:[#allocation9 + $0x718] sm:$0xff] }
 0x1d7   :  { %v3862_v16 = vcombine.low %v625_v42, %v629_v44  ;;  %v4057_v25 = vld [vmem:[#allocation12 + $0x64] ss:$8 sps:$4 sm:$0xff]   ;;  %v4055_v29 = vld [vmem:[#allocation12 + $0x60] ss:$8 sps:$4 sm:$0xff]  }
 0x1d8   :  { %2228 = vmatpush1.bf16.msra.mxu1 %v3798_v48  ;;  %v3734_v48 = vcombine.low %v497_v36, %v501_v37  ;;  %v4058_v36 = vld [vmem:[#allocation12 + $0x160] ss:$8 sps:$4 sm:$0xff]  }
 0x1d9   :  { %2229 = vmatprep.subr.bf16.mxu1 %v3791_v50  ;;  %2189 = vmatpush1.bf16.msra.mxu0 %v3662_v49  ;;  %v3863_v49 = vcombine.high %v625_v42, %v629_v44  ;;  %v3727_v50 = vcombine.high %v489_v43, %v493_v46  ;;  %v4069_v42 = vld [vmem:[#allocation12 + $0x44] ss:$8 sps:$4 sm:$0xff]  }
 0x1da   :  { %2190 = vmatprep.subr.bf16.mxu0 %v3655_v51  ;;  %v617_v51 = vld [vmem:[#allocation9 + $0x6d8] sm:$0xff] }
 0x1db   :  { %v3854_v13 = vcombine.low %v617_v51, %v621_v52 }
 0x1dc   :  { %2230 = vmatpush1.bf16.msra.mxu1 %v3790_v54  ;;  %v3726_v54 = vcombine.low %v489_v43, %v493_v46 }
 0x1dd   :  { %2231 = vmatprep.subr.bf16.mxu1 %v3783_v59  ;;  %2191 = vmatpush1.bf16.msra.mxu0 %v3654_v56  ;;  %v3855_v56 = vcombine.high %v617_v51, %v621_v52  ;;  %v3719_v59 = vcombine.high %v481_v11, %v485_v12 }
 0x1de   :  { %2192 = vmatprep.subr.bf16.mxu0 %v3647_v60  ;;  %v609_v60 = vld [vmem:[#allocation9 + $0x698] sm:$0xff] }
 0x1df   :  { %v3846_v6 = vcombine.low %v609_v60, %v613_v61 }
 0x1e0   :  { %2232 = vmatpush1.bf16.msra.mxu1 %v3782_v15  ;;  %v3718_v15 = vcombine.low %v481_v11, %v485_v12  ;;  %v4067_v12 = vld [vmem:[#allocation12 + $0x40] ss:$8 sps:$4 sm:$0xff]  }
 0x1e1   :  { %2233 = vmatprep.subr.bf16.mxu1 %v3775_v0  ;;  %2193 = vmatpush1.bf16.msra.mxu0 %v3646_v17  ;;  %v3847_v17 = vcombine.high %v609_v60, %v613_v61  ;;  %v3711_v0 = vcombine.high %v473_v62, %v477_v63 }
 0x1e2   :  { %2194 = vmatprep.subr.bf16.mxu0 %v3639_v1  ;;  %v601_v1 = vld [vmem:[#allocation9 + $0x658] sm:$0xff] }
 0x1e3   :  { %v3838_v20 = vcombine.low %v601_v1, %v605_v2 }
 0x1e4   :  { %2234 = vmatpush1.bf16.msra.mxu1 %v3774_v7  ;;  %v3710_v7 = vcombine.low %v473_v62, %v477_v63  ;;  %v4070_v63 = vld [vmem:[#allocation12 + $0x140] ss:$8 sps:$4 sm:$0xff]  }
 0x1e5   :  { %2235 = vmatprep.subr.bf16.mxu1 %v3767_v8  ;;  %2195 = vmatpush1.bf16.msra.mxu0 %v3638_v19  ;;  %v3839_v19 = vcombine.high %v601_v1, %v605_v2  ;;  %v3703_v8 = vcombine.high %v465_v4, %v469_v5  ;;  %v4073_v1 = vld [vmem:[#allocation12 + $0x30] ss:$8 sps:$4 sm:$0xff]   ;;  %v4078_v2 = vld [vmem:[#allocation12 + $0x134] ss:$8 sps:$4 sm:$0xff]   ;;  %v4081_v4 = vld [vmem:[#allocation12 + $0x24] ss:$8 sps:$4 sm:$0xff]  }
 0x1e6   :  { %2196 = vmatprep.subr.bf16.mxu0 %v3759_v9  ;;  %v593_v9 = vld [vmem:[#allocation9 + $0x618] sm:$0xff] }
 0x1e7   :  { %v3831_v18 = vcombine.high %v593_v9, %v597_v10 }
 0x1e8   :  { %2236 = vmatpush1.bf16.msra.mxu1 %v3766_v21  ;;  %v4051_v21 = vld [vmem:[#allocation12 + $0x74] ss:$8 sps:$4 sm:$0xff]  }
 0x1e9   :  { %2237 = vmatprep.subr.bf16.mxu1 %v3887_v23  ;;  %2197 = vmatpush2.bf16.msra.mxu0 %v3758_v22  ;;  %v3830_v22 = vcombine.low %v593_v9, %v597_v10  ;;  %v4049_v23 = vld [vmem:[#allocation12 + $0x70] ss:$8 sps:$4 sm:$0xff]  }
 0x1ea   :  { %2198 = vmatprep.subr.bf16.mxu0 %v3751_v24  ;;  %v4054_v24 = vld [vmem:[#allocation12 + $0x174] ss:$8 sps:$4 sm:$0xff]  }
 0x1ec   :  { %2238 = vmatpush2.bf16.msra.mxu1 %v3886_v30  ;;  %v4060_v30 = vld [vmem:[#allocation12 + $0x164] ss:$8 sps:$4 sm:$0xff]  }
 0x1ed   :  { %2239 = vmatprep.subr.bf16.mxu1 %v3879_v32  ;;  %2199 = vmatpush2.bf16.msra.mxu0 %v3750_v31  ;;  %v4063_v32 = vld [vmem:[#allocation12 + $0x54] ss:$8 sps:$4 sm:$0xff]  }
 0x1ee   :  { %2200 = vmatprep.subr.bf16.mxu0 %v3743_v33 }
 0x1f0   :  { %2240 = vmatpush2.bf16.msra.mxu1 %v3878_v28  ;;  %v4066_v28 = vld [vmem:[#allocation12 + $0x154] ss:$8 sps:$4 sm:$0xff]  }
 0x1f1   :  { %2241 = vmatprep.subr.bf16.mxu1 %v3871_v40  ;;  %2201 = vmatpush2.bf16.msra.mxu0 %v3742_v39 }
 0x1f2   :  { %2202 = vmatprep.subr.bf16.mxu0 %v3735_v41 }
 0x1f4   :  { %2242 = vmatpush2.bf16.msra.mxu1 %v3870_v47 }
 0x1f5   :  { %2243 = vmatprep.subr.bf16.mxu1 %v3863_v49  ;;  %2203 = vmatpush2.bf16.msra.mxu0 %v3734_v48  ;;  %v4064_v49 = vld [vmem:[#allocation12 + $0x150] ss:$8 sps:$4 sm:$0xff]  }
 0x1f6   :  { %2204 = vmatprep.subr.bf16.mxu0 %v3727_v50 }
 0x1f8   :  { %2244 = vmatpush2.bf16.msra.mxu1 %v3862_v16  ;;  %v4072_v16 = vld [vmem:[#allocation12 + $0x144] ss:$8 sps:$4 sm:$0xff]  }
 0x1f9   :  { %2245 = vmatprep.subr.bf16.mxu1 %v3855_v56  ;;  %2205 = vmatpush2.bf16.msra.mxu0 %v3726_v54  ;;  %v4075_v56 = vld [vmem:[#allocation12 + $0x34] ss:$8 sps:$4 sm:$0xff]  }
 0x1fa   :  { %2206 = vmatprep.subr.bf16.mxu0 %v3719_v59 }
 0x1fc   :  { %2246 = vmatpush2.bf16.msra.mxu1 %v3854_v13 }
 0x1fd   :  { %2247 = vmatprep.subr.bf16.mxu1 %v3847_v17  ;;  %2207 = vmatpush2.bf16.msra.mxu0 %v3718_v15 }
 0x1fe   :  { %2208 = vmatprep.subr.bf16.mxu0 %v3711_v0 }
 0x200   :  { %2248 = vmatpush2.bf16.msra.mxu1 %v3846_v6 }
 0x201   :  { %2249 = vmatprep.subr.bf16.mxu1 %v3839_v19  ;;  %2209 = vmatpush2.bf16.msra.mxu0 %v3710_v7 }
 0x202   :  { %2210 = vmatprep.subr.bf16.mxu0 %v3703_v8  ;;  %v4076_v8 = vld [vmem:[#allocation12 + $0x130] ss:$8 sps:$4 sm:$0xff]  }
 0x204   :  { %2250 = vmatpush2.bf16.msra.mxu1 %v3838_v20 }
 0x205   :  { %2251 = vmatprep.subr.bf16.mxu1 %v3831_v18  ;;  %2211 = vmatpush2.bf16.msra.mxu0 %v3702_v14  ;;  %v4079_v18 = vld [vmem:[#allocation12 + $0x20] ss:$8 sps:$4 sm:$0xff]  }
 0x206   :  { %3435 = vmatprep.subr.bf16.mxu0 %v4051_v21  ;;  %v4084_v21 = vld [vmem:[#allocation12 + $0x124] ss:$8 sps:$4 sm:$0xff]  }
 0x208   :  { %2252 = vmatpush2.bf16.msra.mxu1 %v3830_v22  ;;  %2213 = vmatmul.mubr.bf16.vlgmr.msra.gmra.mxu0 %v4560_v38  ;;  %v1968_v27 = vpop.f32.mrf.mxu0  ;;  %v4061_v38 = vld [vmem:[#allocation12 + $0x50] ss:$8 sps:$4 sm:$0xff]   ;;  %v4087_v22 = vld [vmem:[#allocation12 + $0x14] ss:$8 sps:$4 sm:$0xff]  }
 0x209   :  { %3476 = vmatprep.subr.bf16.mxu1 %v4054_v24  ;;  %3436 = vmatpush1.bf16.msra.mxu0 %v4049_v23 }
 0x20a   :  { %v1970_v31 = vpop.f32.mrf.mxu0  ;;  %3437 = vmatprep.subr.bf16.mxu0 %v4057_v25 }
 0x20b   :  { %2254 = vmatmul.mubr.bf16.vlgmr.msra.gmra.mxu1 %v4566_v45  ;;  %v2009_v33 = vpop.f32.mrf.mxu1 }
 0x20c   :  { %v4588_v34 = vadd.f32 %v2009_v33, %v1968_v27  ;;  %v1972_v35 = vpop.f32.mrf.mxu0  ;;  %3477 = vmatpush1.bf16.msra.mxu1 %v4052_v26  ;;  %v4082_v26 = vld [vmem:[#allocation12 + $0x120] ss:$8 sps:$4 sm:$0xff]   ;;  %v4090_v33 = vld [vmem:[#allocation12 + $0x114] ss:$8 sps:$4 sm:$0xff]  }
 0x20d   :  { %v2011_v37 = vpop.f32.mrf.mxu1  ;;  %3478 = vmatprep.subr.bf16.mxu1 %v4060_v30  ;;  %3438 = vmatpush1.bf16.msra.mxu0 %v4055_v29 }
 0x20e   :  { %v2262_v39 = vsel %vm244_vm1, %v4588_v34, 0.0  ;;  %v2326_v40 = vmul.f32 %v4588_v34, %v4588_v34  ;;  %v4594_v41 = vadd.f32 %v2011_v37, %v1970_v31  ;;  %v1973_v45 = vpop.f32.mrf.mxu0  ;;  %3439 = vmatprep.subr.bf16.mxu0 %v4063_v32  ;;  %v4085_v32 = vld [vmem:[#allocation12 + $0x10] ss:$8 sps:$4 sm:$0xff]  }
 0x20f   :  { %v2263_v44 = vrot.slane %v2262_v39, 4  ;;  %v2013_v43 = vpop.f32.mrf.mxu1  ;;  %v4091_v45 = vld [vmem:[#allocation12] ss:$8 sps:$4 sm:$0xff]  }
 0x210   :  { %v2334_v46 = vsel %vm244_vm1, %v2326_v40, 0.0  ;;  %v2269_v47 = vsel %vm244_vm1, %v4594_v41, 0.0  ;;  %v2327_v48 = vmul.f32 %v4594_v41, %v4594_v41  ;;  %3479 = vmatpush1.bf16.msra.mxu1 %v4058_v36  ;;  %v4093_v36 = vld [vmem:[#allocation12 + $0x4] ss:$8 sps:$4 sm:$0xff]   ;;  %v4099_v43 = vld [vmem:[#allocation12 + $0xf4] ss:$8 sps:$4 sm:$0xff]  }
 0x211   :  { %v2264_v50 = vadd.f32 %v2263_v44, %v2262_v39  ;;  %v2335_v51 = vrot.slane %v2334_v46, 4  ;;  %v2270_v52 = vrot.slane %v2269_v47, 4  ;;  %v2014_v11 = vpop.f32.mrf.mxu1  ;;  %3480 = vmatprep.subr.bf16.mxu1 %v4066_v28  ;;  %3440 = vmatpush1.bf16.msra.mxu0 %v4061_v38  ;;  %v4088_v39 = vld [vmem:[#allocation12 + $0x110] ss:$8 sps:$4 sm:$0xff]  }
 0x212   :  { %v2341_v54 = vsel %vm244_vm1, %v2327_v48, 0.0  ;;  %3441 = vmatprep.subr.bf16.mxu0 %v4069_v42  ;;  %v4096_v42 = vld [vmem:[#allocation12 + $0x104] ss:$8 sps:$4 sm:$0xff]   ;;  %v4097_v48 = vld [vmem:[#allocation12 + $0xf0] ss:$8 sps:$4 sm:$0xff]  }
 0x213   :  { %v2265_v59 = vrot.slane %v2264_v50, 2  ;;  %v2336_v60 = vadd.f32 %v2335_v51, %v2334_v46  ;;  %v2271_v61 = vadd.f32 %v2270_v52, %v2269_v47  ;;  %v2342_v62 = vrot.slane %v2341_v54, 4  ;;  %v4094_v47 = vld [vmem:[#allocation12 + $0x100] ss:$8 sps:$4 sm:$0xff]   ;;  %v4100_v51 = vld [vmem:[#allocation12 + $0x1f0] ss:$8 sps:$4 sm:$0xff]  }
 0x214   :  { %3481 = vmatpush1.bf16.msra.mxu1 %v4064_v49  ;;  %v4102_v49 = vld [vmem:[#allocation12 + $0x1f4] ss:$8 sps:$4 sm:$0xff]   ;;  %v4103_v52 = vld [vmem:[#allocation12 + $0xe0] ss:$8 sps:$4 sm:$0xff]   ;;  %v4108_v11 = vld [vmem:[#allocation12 + $0x1e4] ss:$8 sps:$4 sm:$0xff]  }
 0x215   :  { %v2266_v13 = vadd.f32 %v2265_v59, %v2264_v50  ;;  %v2337_v15 = vrot.slane %v2336_v60, 2  ;;  %v2272_v17 = vrot.slane %v2271_v61, 2  ;;  %v2343_v0 = vadd.f32 %v2342_v62, %v2341_v54  ;;  %3482 = vmatprep.subr.bf16.mxu1 %v4072_v16  ;;  %3442 = vmatpush1.bf16.msra.mxu0 %v4067_v12  ;;  %v4105_v50 = vld [vmem:[#allocation12 + $0xe4] ss:$8 sps:$4 sm:$0xff]   ;;  %v4111_v12 = vld [vmem:[#allocation12 + $0xd4] ss:$8 sps:$4 sm:$0xff]  }
 0x216   :  { %3443 = vmatprep.subr.bf16.mxu0 %v4075_v56  ;;  %v4610_v16 = vld [vmem:[#allocation11] ss:$2 sm:$0xff]  ;;  %v4106_v54 = vld [vmem:[#allocation12 + $0x1e0] ss:$8 sps:$4 sm:$0xff]  }
 0x217   :  { %v2267_v5 = vrot.slane %v2266_v13, 1  ;;  %v2338_v6 = vadd.f32 %v2337_v15, %v2336_v60  ;;  %v2273_v7 = vadd.f32 %v2272_v17, %v2271_v61  ;;  %v2344_v19 = vrot.slane %v2343_v0, 2  ;;  %v4109_v56 = vld [vmem:[#allocation12 + $0xd0] ss:$8 sps:$4 sm:$0xff]   ;;  %v4114_v59 = vld [vmem:[#allocation12 + $0x1d4] ss:$8 sps:$4 sm:$0xff]  }
 0x218   :  { %3483 = vmatpush1.bf16.msra.mxu1 %v4070_v63  ;;  %v4117_v60 = vld [vmem:[#allocation12 + $0xc4] ss:$8 sps:$4 sm:$0xff]   ;;  %v2451_v62 = vrot.slane %v4610_v16, %v4535_v55  ;;  %v4616_v63 = vld [vmem:[#allocation11 + $0x1] ss:$2 sm:$0xff] }
 0x219   :  { %v2268_v9 = vadd.f32 %v2267_v5, %v2266_v13  ;;  %v2339_v10 = vrot.slane %v2338_v6, 1  ;;  %v2274_v20 = vrot.slane %v2273_v7, 1  ;;  %v2345_v14 = vadd.f32 %v2344_v19, %v2343_v0  ;;  %3484 = vmatprep.subr.bf16.mxu1 %v4078_v2  ;;  %3444 = vmatpush1.bf16.msra.mxu0 %v4073_v1  ;;  %v4112_v15 = vld [vmem:[#allocation12 + $0x1d0] ss:$8 sps:$4 sm:$0xff]   ;;  %v4115_v0 = vld [vmem:[#allocation12 + $0xc0] ss:$8 sps:$4 sm:$0xff]  }
 0x21a   :  { %3445 = vmatprep.subr.bf16.mxu0 %v4081_v4  ;;  %v4120_v1 = vld [vmem:[#allocation12 + $0x1c4] ss:$8 sps:$4 sm:$0xff]   ;;  %v2502_v2 = vrot.slane %v4616_v63, %v4535_v55  ;;  %v4123_v5 = vld [vmem:[#allocation12 + $0xb4] ss:$8 sps:$4 sm:$0xff]  }
 0x21b   :  { %v4602_v23 = vmul.f32 0.25, %v2268_v9  ;;  %v2340_v24 = vadd.f32 %v2339_v10, %v2338_v6  ;;  %v2275_v25 = vadd.f32 %v2274_v20, %v2273_v7  ;;  %v2346_v27 = vrot.slane %v2345_v14, 1  ;;  %v4118_v9 = vld [vmem:[#allocation12 + $0x1c0] ss:$8 sps:$4 sm:$0xff]   ;;  %v4121_v10 = vld [vmem:[#allocation12 + $0xb0] ss:$8 sps:$4 sm:$0xff]  }
 0x21c   :  { %3485 = vmatpush1.bf16.msra.mxu1 %v4076_v8  ;;  %v2506_v8 = vrot.slane %v4616_v63, %v4541_v58  ;;  %v4126_v20 = vld [vmem:[#allocation12 + $0x1b4] ss:$8 sps:$4 sm:$0xff]  }
 0x21d   :  { %v2390_v29 = vmul.f32 0.25, %v2340_v24  ;;  %v2398_v30 = vmul.f32 %v4602_v23, %v4602_v23  ;;  %v4606_v31 = vmul.f32 0.25, %v2275_v25  ;;  %3486 = vmatprep.subr.bf16.mxu1 %v4084_v21  ;;  %3446 = vmatpush1.bf16.msra.mxu0 %v4079_v18  ;;  %v2347_v35 = vadd.f32 %v2346_v27, %v2345_v14  ;;  %v4132_v24 = vld [vmem:[#allocation12 + $0x1a4] ss:$8 sps:$4 sm:$0xff]  }
 0x21e   :  { %3447 = vmatprep.subr.bf16.mxu0 %v4087_v22  ;;  %v2414_v61 = vsub.f32 %v4588_v34, %v4602_v23  ;;  %v2455_v34 = vrot.slane %v4610_v16, %v4541_v58  ;;  %v4124_v22 = vld [vmem:[#allocation12 + $0x1b0] ss:$8 sps:$4 sm:$0xff]   ;;  %v4127_v23 = vld [vmem:[#allocation12 + $0xa0] ss:$8 sps:$4 sm:$0xff]  }
 0x21f   :  { %v2406_v37 = vsub.f32 %v2390_v29, %v2398_v30  ;;  %v2399_v38 = vmul.f32 %v4606_v31, %v4606_v31  ;;  %v2391_v28 = vmul.f32 0.25, %v2347_v35  ;;  %v2415_v4 = vsub.f32 %v4594_v41, %v4606_v31  ;;  %v4129_v41 = vld [vmem:[#allocation12 + $0xa4] ss:$8 sps:$4 sm:$0xff]   ;;  %v4130_v29 = vld [vmem:[#allocation12 + $0x1a0] ss:$8 sps:$4 sm:$0xff]  }
 0x220   :  { %3487 = vmatpush1.bf16.msra.mxu1 %v4082_v26  ;;  %v4135_v26 = vld [vmem:[#allocation12 + $0x94] ss:$8 sps:$4 sm:$0xff]   ;;  %v4133_v31 = vld [vmem:[#allocation12 + $0x90] ss:$8 sps:$4 sm:$0xff]  }
 0x221   :  { %v2422_v40 = vadd.f32 1e-05, %v2406_v37  ;;  %3488 = vmatprep.subr.bf16.mxu1 %v4090_v33  ;;  %3448 = vmatpush1.bf16.msra.mxu0 %v4085_v32  ;;  %v2407_v44 = vsub.f32 %v2391_v28, %v2399_v38  ;;  %v4138_v32 = vld [vmem:[#allocation12 + $0x194] ss:$8 sps:$4 sm:$0xff]   ;;  %v4141_v33 = vld [vmem:[#allocation12 + $0x84] ss:$8 sps:$4 sm:$0xff]  }
 0x222   :  { %3449 = vmatprep.subr.bf16.mxu0 %v4093_v36  ;;  %v4136_v35 = vld [vmem:[#allocation12 + $0x190] ss:$8 sps:$4 sm:$0xff]   ;;  %v4139_v36 = vld [vmem:[#allocation12 + $0x80] ss:$8 sps:$4 sm:$0xff]   ;;  %v4144_v37 = vld [vmem:[#allocation12 + $0x184] ss:$8 sps:$4 sm:$0xff]  }
 0x223   :  { %4249 = vrsqrt.f32 %v2422_v40  ;;  %v2423_v46 = vadd.f32 1e-05, %v2407_v44  ;;  %v4147_v38 = vld [vmem:[#allocation12 + $0x274] ss:$8 sps:$4 sm:$0xff]   ;;  %v4142_v28 = vld [vmem:[#allocation12 + $0x180] ss:$8 sps:$4 sm:$0xff]  }
 0x224   :  { %3489 = vmatpush1.bf16.msra.mxu1 %v4088_v39  ;;  %v4150_v39 = vld [vmem:[#allocation12 + $0x374] ss:$8 sps:$4 sm:$0xff]  }
 0x225   :  { %3490 = vmatprep.subr.bf16.mxu1 %v4096_v42  ;;  %3450 = vmatpush1.bf16.msra.mxu0 %v4091_v45  ;;  %4251 = vrsqrt.f32 %v2423_v46 }
 0x226   :  { %3451 = vmatprep.subr.bf16.mxu0 %v4099_v43 }
 0x228   :  { %3491 = vmatpush1.bf16.msra.mxu1 %v4094_v47 }
 0x229   :  { %3492 = vmatprep.subr.bf16.mxu1 %v4102_v49  ;;  %3452 = vmatpush2.bf16.msra.mxu0 %v4097_v48 }
 0x22a   :  { %3453 = vmatprep.subr.bf16.mxu0 %v4105_v50 }
 0x22c   :  { %3493 = vmatpush2.bf16.msra.mxu1 %v4100_v51 }
 0x22d   :  { %3494 = vmatprep.subr.bf16.mxu1 %v4108_v11  ;;  %3454 = vmatpush2.bf16.msra.mxu0 %v4103_v52 }
 0x22e   :  { %3455 = vmatprep.subr.bf16.mxu0 %v4111_v12 }
 0x230   :  { %v4250_v13 = vpop.eup %4249  ;;  %3495 = vmatpush2.bf16.msra.mxu1 %v4106_v54 }
 0x231   :  { %v2438_v17 = vmul.f32 %v4250_v13, %v2414_v61  ;;  %3496 = vmatprep.subr.bf16.mxu1 %v4114_v59  ;;  %3456 = vmatpush2.bf16.msra.mxu0 %v4109_v56 }
 0x232   :  { %3457 = vmatprep.subr.bf16.mxu0 %v4117_v60  ;;  %v4252_v6 = vpop.eup %4251 }
 0x233   :  { %v2488_v7 = vmul.f32 %v2451_v62, %v2438_v17  ;;  %v2439_v19 = vmul.f32 %v4252_v6, %v2415_v4 }
 0x234   :  { %3497 = vmatpush2.bf16.msra.mxu1 %v4112_v15 }
 0x235   :  { %3498 = vmatprep.subr.bf16.mxu1 %v4120_v1  ;;  %3458 = vmatpush2.bf16.msra.mxu0 %v4115_v0  ;;  %v2539_v14 = vadd.f32 %v2502_v2, %v2488_v7  ;;  %v2489_v18 = vmul.f32 %v2455_v34, %v2439_v19 }
 0x236   :  { %3459 = vmatprep.subr.bf16.mxu0 %v4123_v5 }
 0x237   :  { %v2540_v21 = vadd.f32 %v2506_v8, %v2489_v18  ;;  %v2547_v25 = vmax.f32 %v2539_v14, 0.0 }
 0x238   :  { %3499 = vmatpush2.bf16.msra.mxu1 %v4118_v9 }
 0x239   :  { %3500 = vmatprep.subr.bf16.mxu1 %v4126_v20  ;;  %3460 = vmatpush2.bf16.msra.mxu0 %v4121_v10  ;;  %v2548_v27 = vmax.f32 %v2540_v21, 0.0 }
 0x23a   :  { %3461 = vmatprep.subr.bf16.mxu0 %v4129_v41 }
 0x23b   :  { %v4626_v30 = vpack.c.bf16 %v2548_v27, %v2547_v25 }
 0x23c   :  { %3501 = vmatpush2.bf16.msra.mxu1 %v4124_v22 }
 0x23d   :  { %3502 = vmatprep.subr.bf16.mxu1 %v4132_v24  ;;  %3462 = vmatpush2.bf16.msra.mxu0 %v4127_v23 }
 0x23e   :  { %3463 = vmatprep.subr.bf16.mxu0 %v4135_v26 }
 0x240   :  { %3503 = vmatpush2.bf16.msra.mxu1 %v4130_v29 }
 0x241   :  { %3504 = vmatprep.subr.bf16.mxu1 %v4138_v32  ;;  %3464 = vmatpush2.bf16.msra.mxu0 %v4133_v31 }
 0x242   :  { %3465 = vmatprep.subr.bf16.mxu0 %v4141_v33 }
 0x244   :  { %3505 = vmatpush2.bf16.msra.mxu1 %v4136_v35 }
 0x245   :  { %3506 = vmatprep.subr.bf16.mxu1 %v4144_v37  ;;  %3466 = vmatpush2.bf16.msra.mxu0 %v4139_v36  ;;  %v2459_v36 = vrot.slane %v4610_v16, %v4538_v57 }
 0x246   :  { %3517 = vmatprep.subr.bf16.mxu0 %v4147_v38 }
 0x248   :  { %v2050_v40 = vpop.f32.mrf.mxu0  ;;  %3507 = vmatpush2.bf16.msra.mxu1 %v4142_v28  ;;  %v2510_v28 = vrot.slane %v4616_v63, %v4538_v57 }
 0x249   :  { %3558 = vmatprep.subr.bf16.mxu1 %v4150_v39 }
 0x24a   :  { %v2052_v45 = vpop.f32.mrf.mxu0 }
 0x24b   :  { %v2091_v42 = vpop.f32.mrf.mxu1 }
 0x24c   :  { %v2092_v44 = vadd.f32 %v2091_v42, %v2050_v40  ;;  %v2054_v43 = vpop.f32.mrf.mxu0  ;;  %v2463_v40 = vrot.slane %v4610_v16, %v4548_v3 }
 0x24d   :  { %v2093_v46 = vpop.f32.mrf.mxu1 }
 0x24e   :  { %v2276_v47 = vsel %vm244_vm1, %v2092_v44, 0.0  ;;  %v2328_v48 = vmul.f32 %v2092_v44, %v2092_v44  ;;  %v2094_v49 = vadd.f32 %v2093_v46, %v2052_v45  ;;  %v2055_v50 = vpop.f32.mrf.mxu0  ;;  %v4428_v45 = vmov 1983009808  }
 0x24f   :  { %v2277_v51 = vrot.slane %v2276_v47, 4  ;;  %v2095_v52 = vpop.f32.mrf.mxu1  ;;  %v2574_v42 = vunpack.c.l.s4 %v4428_v45 }
 0x250   :  { %v2348_v11 = vsel %vm244_vm1, %v2328_v48, 0.0  ;;  %v2283_v12 = vsel %vm244_vm1, %v2094_v49, 0.0  ;;  %v2329_v54 = vmul.f32 %v2094_v49, %v2094_v49 }
 0x251   :  { %v2278_v56 = vadd.f32 %v2277_v51, %v2276_v47  ;;  %v2349_v59 = vrot.slane %v2348_v11, 4  ;;  %v2284_v60 = vrot.slane %v2283_v12, 4  ;;  %v2096_v61 = vpop.f32.mrf.mxu1  ;;  %v2575_v51 = vunpack.c.0.s8 %v2574_v42 }
 0x252   :  { %v2355_v62 = vsel %vm244_vm1, %v2329_v54, 0.0 }
 0x253   :  { %v2279_v13 = vrot.slane %v2278_v56, 2  ;;  %v2350_v15 = vadd.f32 %v2349_v59, %v2348_v11  ;;  %v2285_v17 = vadd.f32 %v2284_v60, %v2283_v12  ;;  %v2356_v0 = vrot.slane %v2355_v62, 4 }
 0x254   :  { %v4641_v57 = vsub.s32 %v2575_v51, %v4532_v53 }
 0x255   :  { %v2280_v1 = vadd.f32 %v2279_v13, %v2278_v56  ;;  %v2351_v2 = vrot.slane %v2350_v15, 2  ;;  %v2286_v4 = vrot.slane %v2285_v17, 2  ;;  %v2357_v34 = vadd.f32 %v2356_v0, %v2355_v62  ;;  %v4153_v0 = vld [vmem:[#allocation12 + $0x264] ss:$8 sps:$4 sm:$0xff]  }
 0x256   :  { %v2579_v54 = vrot.slane %v4626_v30, %v4641_v57  ;;  %v4151_v30 = vld [vmem:[#allocation12 + $0x260] ss:$8 sps:$4 sm:$0xff]  }
 0x257   :  { %v2281_v5 = vrot.slane %v2280_v1, 1  ;;  %v2352_v6 = vadd.f32 %v2351_v2, %v2350_v15  ;;  %v2287_v7 = vadd.f32 %v2286_v4, %v2285_v17  ;;  %v2358_v19 = vrot.slane %v2357_v34, 2  ;;  %v4145_v15 = vld [vmem:[#allocation12 + $0x270] ss:$8 sps:$4 sm:$0xff]   ;;  %v4154_v4 = vld [vmem:[#allocation12 + $0x360] ss:$8 sps:$4 sm:$0xff]  }
 0x258   :  { %v4148_v17 = vld [vmem:[#allocation12 + $0x370] ss:$8 sps:$4 sm:$0xff]  }
 0x259   :  { %v2282_v8 = vadd.f32 %v2281_v5, %v2280_v1  ;;  %v2353_v9 = vrot.slane %v2352_v6, 1  ;;  %v2288_v10 = vrot.slane %v2287_v7, 1  ;;  %v2359_v20 = vadd.f32 %v2358_v19, %v2357_v34  ;;  %v4156_v1 = vld [vmem:[#allocation12 + $0x364] ss:$8 sps:$4 sm:$0xff]   ;;  %v4159_v34 = vld [vmem:[#allocation12 + $0x254] ss:$8 sps:$4 sm:$0xff]  }
 0x25a   :  { %v4162_v5 = vld [vmem:[#allocation12 + $0x354] ss:$8 sps:$4 sm:$0xff]  }
 0x25b   :  { %v2320_v14 = vmul.f32 0.25, %v2282_v8  ;;  %v2354_v18 = vadd.f32 %v2353_v9, %v2352_v6  ;;  %v2289_v41 = vadd.f32 %v2288_v10, %v2287_v7  ;;  %v2360_v21 = vrot.slane %v2359_v20, 1  ;;  %v4157_v9 = vld [vmem:[#allocation12 + $0x250] ss:$8 sps:$4 sm:$0xff]  }
 0x25c   :  { %v4160_v10 = vld [vmem:[#allocation12 + $0x350] ss:$8 sps:$4 sm:$0xff]  }
 0x25d   :  { %v2392_v22 = vmul.f32 0.25, %v2354_v18  ;;  %v2400_v23 = vmul.f32 %v2320_v14, %v2320_v14  ;;  %v2321_v24 = vmul.f32 0.25, %v2289_v41  ;;  %v2361_v25 = vadd.f32 %v2360_v21, %v2359_v20  ;;  %v4168_v18 = vld [vmem:[#allocation12 + $0x344] ss:$8 sps:$4 sm:$0xff]  }
 0x25e   :  { %v2416_v35 = vsub.f32 %v2092_v44, %v2320_v14  ;;  %v2514_v44 = vrot.slane %v4616_v63, %v4548_v3  ;;  %v4165_v14 = vld [vmem:[#allocation12 + $0x244] ss:$8 sps:$4 sm:$0xff]  }
 0x25f   :  { %v2408_v27 = vsub.f32 %v2392_v22, %v2400_v23  ;;  %v2401_v26 = vmul.f32 %v2321_v24, %v2321_v24  ;;  %v2393_v29 = vmul.f32 0.25, %v2361_v25  ;;  %v2417_v39 = vsub.f32 %v2094_v49, %v2321_v24 }
 0x261   :  { %v2424_v31 = vadd.f32 1e-05, %v2408_v27  ;;  %v2409_v32 = vsub.f32 %v2393_v29, %v2401_v26 }
 0x263   :  { %4253 = vrsqrt.f32 %v2424_v31  ;;  %v2425_v33 = vadd.f32 1e-05, %v2409_v32  ;;  %v4163_v31 = vld [vmem:[#allocation12 + $0x240] ss:$8 sps:$4 sm:$0xff]  }
 0x264   :  { %v4166_v32 = vld [vmem:[#allocation12 + $0x340] ss:$8 sps:$4 sm:$0xff]  }
 0x265   :  { %4255 = vrsqrt.f32 %v2425_v33 }
 0x270   :  { %v4254_v37 = vpop.eup %4253 }
 0x271   :  { %v2440_v38 = vmul.f32 %v4254_v37, %v2416_v35 }
 0x272   :  { %v4256_v43 = vpop.eup %4255 }
 0x273   :  { %v2490_v46 = vmul.f32 %v2459_v36, %v2440_v38  ;;  %v2441_v47 = vmul.f32 %v4256_v43, %v2417_v39  ;;  %v4171_v38 = vld [vmem:[#allocation12 + $0x234] ss:$8 sps:$4 sm:$0xff]  }
 0x275   :  { %v2541_v48 = vadd.f32 %v2510_v28, %v2490_v46  ;;  %v2491_v50 = vmul.f32 %v2463_v40, %v2441_v47  ;;  %v4174_v28 = vld [vmem:[#allocation12 + $0x334] ss:$8 sps:$4 sm:$0xff]   ;;  %v4169_v46 = vld [vmem:[#allocation12 + $0x230] ss:$8 sps:$4 sm:$0xff]  }
 0x276   :  { %v4172_v47 = vld [vmem:[#allocation12 + $0x330] ss:$8 sps:$4 sm:$0xff]  }
 0x277   :  { %v2542_v52 = vadd.f32 %v2514_v44, %v2491_v50  ;;  %v2549_v11 = vmax.f32 %v2541_v48, 0.0 }
 0x279   :  { %v2550_v12 = vmax.f32 %v2542_v52, 0.0  ;;  %v4177_v52 = vld [vmem:[#allocation12 + $0x224] ss:$8 sps:$4 sm:$0xff]  }
 0x27b   :  { %v3889_v49 = vpack.c.bf16 %v2550_v12, %v2549_v11  ;;  %v4180_v11 = vld [vmem:[#allocation12 + $0x324] ss:$8 sps:$4 sm:$0xff]  }
 0x27d   :  { %v2586_v56 = vrot.slane %v3889_v49, %v4641_v57 }
 0x27f   :  { %v2587_v59 = vcombine.low %v2579_v54, %v2586_v56  ;;  %v4020_v60 = vcombine.low %v2586_v56, %v2586_v56 }
 0x281   :  { %v2760_v61 = vrot.slane %v2587_v59, %v4641_v57  ;;  %v2767_v3 = vrot.slane %v4020_v60, %v4641_v57  ;;  %v4175_v59 = vld [vmem:[#allocation12 + $0x220] ss:$8 sps:$4 sm:$0xff]  }
 0x282   :  { %v4178_v60 = vld [vmem:[#allocation12 + $0x320] ss:$8 sps:$4 sm:$0xff]  }
 0x283   :  { %v2768_v62 = vcombine.high %v2760_v61, %v2760_v61  ;;  %v2769_v13 = vcombine.high %v2767_v3, %v2767_v3 }
 0x285   :  { %3467 = vmatprep.mubr.bf16.mxu0 %v2768_v62  ;;  %3508 = vmatprep.mubr.bf16.mxu1 %v2769_v13 }
 0x286   :  { %3468 = vmatmul.mubr.bf16.vlgmr.msra.gmra.mxu0 %v2760_v61  ;;  %3509 = vmatmul.mubr.bf16.vlgmr.msra.gmra.mxu1 %v2767_v3 }
 0x287   :  { %3518 = vmatpush1.bf16.msra.mxu0 %v4145_v15  ;;  %3559 = vmatpush1.bf16.msra.mxu1 %v4148_v17  ;;  %v4183_v15 = vld [vmem:[#allocation12 + $0x214] ss:$8 sps:$4 sm:$0xff]  }
 0x288   :  { %v2132_v2 = vpop.f32.mrf.mxu0  ;;  %3519 = vmatprep.subr.bf16.mxu0 %v4153_v0  ;;  %3560 = vmatprep.subr.bf16.mxu1 %v4156_v1  ;;  %v4186_v17 = vld [vmem:[#allocation12 + $0x314] ss:$8 sps:$4 sm:$0xff]  }
 0x28a   :  { %v2134_v6 = vpop.f32.mrf.mxu0 }
 0x28b   :  { %v2173_v7 = vpop.f32.mrf.mxu1  ;;  %3520 = vmatpush1.bf16.msra.mxu0 %v4151_v30  ;;  %3561 = vmatpush1.bf16.msra.mxu1 %v4154_v4  ;;  %v4181_v4 = vld [vmem:[#allocation12 + $0x210] ss:$8 sps:$4 sm:$0xff]  }
 0x28c   :  { %v4648_v19 = vadd.f32 %v2173_v7, %v2132_v2  ;;  %v2136_v8 = vpop.f32.mrf.mxu0  ;;  %3521 = vmatprep.subr.bf16.mxu0 %v4159_v34  ;;  %3562 = vmatprep.subr.bf16.mxu1 %v4162_v5  ;;  %v4184_v34 = vld [vmem:[#allocation12 + $0x310] ss:$8 sps:$4 sm:$0xff]  }
 0x28d   :  { %v2175_v20 = vpop.f32.mrf.mxu1  ;;  %v4189_v8 = vld [vmem:[#allocation12 + $0x204] ss:$8 sps:$4 sm:$0xff]  }
 0x28e   :  { %v2290_v41 = vsel %vm244_vm1, %v4648_v19, 0.0  ;;  %v2330_v21 = vmul.f32 %v4648_v19, %v4648_v19  ;;  %v4654_v22 = vadd.f32 %v2175_v20, %v2134_v6  ;;  %v2137_v23 = vpop.f32.mrf.mxu0 }
 0x28f   :  { %v2291_v24 = vrot.slane %v2290_v41, 4  ;;  %v2177_v25 = vpop.f32.mrf.mxu1  ;;  %3522 = vmatpush1.bf16.msra.mxu0 %v4157_v9  ;;  %3563 = vmatpush1.bf16.msra.mxu1 %v4160_v10  ;;  %v4192_v9 = vld [vmem:[#allocation12 + $0x304] ss:$8 sps:$4 sm:$0xff]  }
 0x290   :  { %v2362_v27 = vsel %vm244_vm1, %v2330_v21, 0.0  ;;  %v2297_v26 = vsel %vm244_vm1, %v4654_v22, 0.0  ;;  %v2331_v29 = vmul.f32 %v4654_v22, %v4654_v22  ;;  %3523 = vmatprep.subr.bf16.mxu0 %v4165_v14  ;;  %3564 = vmatprep.subr.bf16.mxu1 %v4168_v18  ;;  %v4190_v21 = vld [vmem:[#allocation12 + $0x300] ss:$8 sps:$4 sm:$0xff]   ;;  %v4198_v25 = vld [vmem:[#allocation12 + $0x3f4] ss:$8 sps:$4 sm:$0xff]  }
 0x291   :  { %v2292_v33 = vadd.f32 %v2291_v24, %v2290_v41  ;;  %v2363_v35 = vrot.slane %v2362_v27, 4  ;;  %v2298_v36 = vrot.slane %v2297_v26, 4  ;;  %v2178_v37 = vpop.f32.mrf.mxu1  ;;  %v4187_v41 = vld [vmem:[#allocation12 + $0x200] ss:$8 sps:$4 sm:$0xff]   ;;  %v4195_v24 = vld [vmem:[#allocation12 + $0x2f4] ss:$8 sps:$4 sm:$0xff]  }
 0x292   :  { %v2369_v39 = vsel %vm244_vm1, %v2331_v29, 0.0  ;;  %v4193_v29 = vld [vmem:[#allocation12 + $0x2f0] ss:$8 sps:$4 sm:$0xff]   ;;  %v4207_v37 = vld [vmem:[#allocation12 + $0x2d4] ss:$8 sps:$4 sm:$0xff]  }
 0x293   :  { %v2293_v40 = vrot.slane %v2292_v33, 2  ;;  %v2364_v45 = vadd.f32 %v2363_v35, %v2362_v27  ;;  %v2299_v42 = vadd.f32 %v2298_v36, %v2297_v26  ;;  %v2370_v43 = vrot.slane %v2369_v39, 4  ;;  %3524 = vmatpush1.bf16.msra.mxu0 %v4163_v31  ;;  %3565 = vmatpush1.bf16.msra.mxu1 %v4166_v32  ;;  %v4196_v31 = vld [vmem:[#allocation12 + $0x3f0] ss:$8 sps:$4 sm:$0xff]   ;;  %v4201_v32 = vld [vmem:[#allocation12 + $0x2e4] ss:$8 sps:$4 sm:$0xff]  }
 0x294   :  { %3525 = vmatprep.subr.bf16.mxu0 %v4171_v38  ;;  %3566 = vmatprep.subr.bf16.mxu1 %v4174_v28  ;;  %v4199_v35 = vld [vmem:[#allocation12 + $0x2e0] ss:$8 sps:$4 sm:$0xff]   ;;  %v4210_v38 = vld [vmem:[#allocation12 + $0x3d4] ss:$8 sps:$4 sm:$0xff]   ;;  %v2466_v28 = vsub.s32 4, %v4532_v53 }
 0x295   :  { %v2294_v44 = vadd.f32 %v2293_v40, %v2292_v33  ;;  %v2365_v48 = vrot.slane %v2364_v45, 2  ;;  %v2300_v50 = vrot.slane %v2299_v42, 2  ;;  %v2371_v51 = vadd.f32 %v2370_v43, %v2369_v39  ;;  %v4204_v33 = vld [vmem:[#allocation12 + $0x3e4] ss:$8 sps:$4 sm:$0xff]   ;;  %v4202_v36 = vld [vmem:[#allocation12 + $0x3e0] ss:$8 sps:$4 sm:$0xff]  }
 0x296   :  { %v4205_v39 = vld [vmem:[#allocation12 + $0x2d0] ss:$8 sps:$4 sm:$0xff]   ;;  %v2470_v43 = vsub.s32 5, %v4532_v53 }
 0x297   :  { %v2295_v12 = vrot.slane %v2294_v44, 1  ;;  %v2366_v49 = vadd.f32 %v2365_v48, %v2364_v45  ;;  %v2301_v54 = vadd.f32 %v2300_v50, %v2299_v42  ;;  %v2372_v56 = vrot.slane %v2371_v51, 2  ;;  %3526 = vmatpush1.bf16.msra.mxu0 %v4169_v46  ;;  %3567 = vmatpush1.bf16.msra.mxu1 %v4172_v47  ;;  %v4208_v40 = vld [vmem:[#allocation12 + $0x3d0] ss:$8 sps:$4 sm:$0xff]   ;;  %v4213_v45 = vld [vmem:[#allocation12 + $0x2c4] ss:$8 sps:$4 sm:$0xff]  }
 0x298   :  { %3527 = vmatprep.subr.bf16.mxu0 %v4177_v52  ;;  %3568 = vmatprep.subr.bf16.mxu1 %v4180_v11  ;;  %v4216_v42 = vld [vmem:[#allocation12 + $0x3c4] ss:$8 sps:$4 sm:$0xff]   ;;  %v2467_v47 = vrot.slane %v4610_v16, %v2466_v28  ;;  %v4211_v48 = vld [vmem:[#allocation12 + $0x2c0] ss:$8 sps:$4 sm:$0xff]   ;;  %v4219_v52 = vld [vmem:[#allocation12 + $0x2b4] ss:$8 sps:$4 sm:$0xff]  }
 0x299   :  { %v2296_v61 = vadd.f32 %v2295_v12, %v2294_v44  ;;  %v2367_v3 = vrot.slane %v2366_v49, 1  ;;  %v2302_v62 = vrot.slane %v2301_v54, 1  ;;  %v2373_v13 = vadd.f32 %v2372_v56, %v2371_v51  ;;  %v4214_v50 = vld [vmem:[#allocation12 + $0x3c0] ss:$8 sps:$4 sm:$0xff]   ;;  %v4222_v11 = vld [vmem:[#allocation12 + $0x3b4] ss:$8 sps:$4 sm:$0xff]  }
 0x29a   :  { %v2518_v12 = vrot.slane %v4616_v63, %v2466_v28 }
 0x29b   :  { %v4662_v0 = vmul.f32 0.25, %v2296_v61  ;;  %v2368_v1 = vadd.f32 %v2367_v3, %v2366_v49  ;;  %v2303_v2 = vadd.f32 %v2302_v62, %v2301_v54  ;;  %v2374_v30 = vrot.slane %v2373_v13, 1  ;;  %3528 = vmatpush1.bf16.msra.mxu0 %v4175_v59  ;;  %3569 = vmatpush1.bf16.msra.mxu1 %v4178_v60  ;;  %v4217_v61 = vld [vmem:[#allocation12 + $0x2b0] ss:$8 sps:$4 sm:$0xff]   ;;  %v4225_v62 = vld [vmem:[#allocation12 + $0x2a4] ss:$8 sps:$4 sm:$0xff]  }
 0x29c   :  { %3529 = vmatprep.subr.bf16.mxu0 %v4183_v15  ;;  %3570 = vmatprep.subr.bf16.mxu1 %v4186_v17  ;;  %v2471_v54 = vrot.slane %v4610_v16, %v2470_v43  ;;  %v2522_v60 = vrot.slane %v4616_v63, %v2470_v43  ;;  %v4220_v3 = vld [vmem:[#allocation12 + $0x3b0] ss:$8 sps:$4 sm:$0xff]  }
 0x29d   :  { %v2394_v5 = vmul.f32 0.25, %v2368_v1  ;;  %v2402_v6 = vmul.f32 %v4662_v0, %v4662_v0  ;;  %v4666_v7 = vmul.f32 0.25, %v2303_v2  ;;  %v2375_v10 = vadd.f32 %v2374_v30, %v2373_v13  ;;  %v4228_v13 = vld [vmem:[#allocation12 + $0x3a4] ss:$8 sps:$4 sm:$0xff]   ;;  %v4226_v1 = vld [vmem:[#allocation12 + $0x3a0] ss:$8 sps:$4 sm:$0xff]  }
 0x29e   :  { %v2418_v46 = vsub.f32 %v4648_v19, %v4662_v0  ;;  %v4231_v2 = vld [vmem:[#allocation12 + $0x294] ss:$8 sps:$4 sm:$0xff]  }
 0x29f   :  { %v2410_v20 = vsub.f32 %v2394_v5, %v2402_v6  ;;  %v2403_v14 = vmul.f32 %v4666_v7, %v4666_v7  ;;  %v2395_v18 = vmul.f32 0.25, %v2375_v10  ;;  %3530 = vmatpush1.bf16.msra.mxu0 %v4181_v4  ;;  %3571 = vmatpush1.bf16.msra.mxu1 %v4184_v34  ;;  %v2419_v49 = vsub.f32 %v4654_v22, %v4666_v7  ;;  %v4223_v22 = vld [vmem:[#allocation12 + $0x2a0] ss:$8 sps:$4 sm:$0xff]   ;;  %v4234_v30 = vld [vmem:[#allocation12 + $0x394] ss:$8 sps:$4 sm:$0xff]  }
 0x2a0   :  { %3531 = vmatprep.subr.bf16.mxu0 %v4189_v8  ;;  %3572 = vmatprep.subr.bf16.mxu1 %v4192_v9  ;;  %v4229_v5 = vld [vmem:[#allocation12 + $0x290] ss:$8 sps:$4 sm:$0xff]   ;;  %v4237_v8 = vld [vmem:[#allocation12 + $0x284] ss:$8 sps:$4 sm:$0xff]   ;;  %v4235_v10 = vld [vmem:[#allocation12 + $0x280] ss:$8 sps:$4 sm:$0xff]  }
 0x2a1   :  { %v2426_v23 = vadd.f32 1e-05, %v2410_v20  ;;  %v2411_v27 = vsub.f32 %v2395_v18, %v2403_v14  ;;  %v4232_v6 = vld [vmem:[#allocation12 + $0x390] ss:$8 sps:$4 sm:$0xff]   ;;  %v4240_v9 = vld [vmem:[#allocation12 + $0x384] ss:$8 sps:$4 sm:$0xff]  }
 0x2a2   :  { %v4238_v20 = vld [vmem:[#allocation12 + $0x380] ss:$8 sps:$4 sm:$0xff]  }
 0x2a3   :  { %4257 = vrsqrt.f32 %v2426_v23  ;;  %v2427_v26 = vadd.f32 1e-05, %v2411_v27  ;;  %3532 = vmatpush1.bf16.msra.mxu0 %v4187_v41  ;;  %3573 = vmatpush1.bf16.msra.mxu1 %v4190_v21 }
 0x2a4   :  { %3533 = vmatprep.subr.bf16.mxu0 %v4195_v24  ;;  %3574 = vmatprep.subr.bf16.mxu1 %v4198_v25 }
 0x2a5   :  { %4259 = vrsqrt.f32 %v2427_v26 }
 0x2a7   :  { %3534 = vmatpush2.bf16.msra.mxu0 %v4193_v29  ;;  %3575 = vmatpush2.bf16.msra.mxu1 %v4196_v31 }
 0x2a8   :  { %3535 = vmatprep.subr.bf16.mxu0 %v4201_v32  ;;  %3576 = vmatprep.subr.bf16.mxu1 %v4204_v33 }
 0x2ab   :  { %3536 = vmatpush2.bf16.msra.mxu0 %v4199_v35  ;;  %3577 = vmatpush2.bf16.msra.mxu1 %v4202_v36 }
 0x2ac   :  { %3537 = vmatprep.subr.bf16.mxu0 %v4207_v37  ;;  %3578 = vmatprep.subr.bf16.mxu1 %v4210_v38 }
 0x2af   :  { %3538 = vmatpush2.bf16.msra.mxu0 %v4205_v39  ;;  %3579 = vmatpush2.bf16.msra.mxu1 %v4208_v40 }
 0x2b0   :  { %v4258_v44 = vpop.eup %4257  ;;  %3539 = vmatprep.subr.bf16.mxu0 %v4213_v45  ;;  %3580 = vmatprep.subr.bf16.mxu1 %v4216_v42 }
 0x2b1   :  { %v2442_v51 = vmul.f32 %v4258_v44, %v2418_v46 }
 0x2b2   :  { %v4260_v19 = vpop.eup %4259 }
 0x2b3   :  { %v2492_v56 = vmul.f32 %v2467_v47, %v2442_v51  ;;  %v2443_v59 = vmul.f32 %v4260_v19, %v2419_v49  ;;  %3540 = vmatpush2.bf16.msra.mxu0 %v4211_v48  ;;  %3581 = vmatpush2.bf16.msra.mxu1 %v4214_v50 }
 0x2b4   :  { %3541 = vmatprep.subr.bf16.mxu0 %v4219_v52  ;;  %3582 = vmatprep.subr.bf16.mxu1 %v4222_v11 }
 0x2b5   :  { %v2543_v15 = vadd.f32 %v2518_v12, %v2492_v56  ;;  %v2493_v17 = vmul.f32 %v2471_v54, %v2443_v59 }
 0x2b7   :  { %v2544_v0 = vadd.f32 %v2522_v60, %v2493_v17  ;;  %3542 = vmatpush2.bf16.msra.mxu0 %v4217_v61  ;;  %3583 = vmatpush2.bf16.msra.mxu1 %v4220_v3  ;;  %v2551_v4 = vmax.f32 %v2543_v15, 0.0 }
 0x2b8   :  { %3543 = vmatprep.subr.bf16.mxu0 %v4225_v62  ;;  %3584 = vmatprep.subr.bf16.mxu1 %v4228_v13 }
 0x2b9   :  { %v2552_v34 = vmax.f32 %v2544_v0, 0.0 }
 0x2bb   :  { %3544 = vmatpush2.bf16.msra.mxu0 %v4223_v22  ;;  %3585 = vmatpush2.bf16.msra.mxu1 %v4226_v1  ;;  %v4680_v7 = vpack.c.bf16 %v2552_v34, %v2551_v4  ;;  %v2474_v34 = vsub.s32 6, %v4532_v53 }
 0x2bc   :  { %3545 = vmatprep.subr.bf16.mxu0 %v4231_v2  ;;  %3586 = vmatprep.subr.bf16.mxu1 %v4234_v30 }
 0x2bf   :  { %3546 = vmatpush2.bf16.msra.mxu0 %v4229_v5  ;;  %3587 = vmatpush2.bf16.msra.mxu1 %v4232_v6  ;;  %v2478_v5 = vsub.s32 7, %v4532_v53 }
 0x2c0   :  { %3547 = vmatprep.subr.bf16.mxu0 %v4237_v8  ;;  %3588 = vmatprep.subr.bf16.mxu1 %v4240_v9  ;;  %v2475_v8 = vrot.slane %v4610_v16, %v2474_v34 }
 0x2c3   :  { %3548 = vmatpush2.bf16.msra.mxu0 %v4235_v10  ;;  %3589 = vmatpush2.bf16.msra.mxu1 %v4238_v20  ;;  %v2526_v20 = vrot.slane %v4616_v63, %v2474_v34 }
 0x2c8   :  { %v2214_v14 = vpop.f32.mrf.mxu0 }
 0x2ca   :  { %v2216_v18 = vpop.f32.mrf.mxu0 }
 0x2cb   :  { %v2255_v41 = vpop.f32.mrf.mxu1 }
 0x2cc   :  { %v2256_v21 = vadd.f32 %v2255_v41, %v2214_v14  ;;  %v2218_v23 = vpop.f32.mrf.mxu0 }
 0x2cd   :  { %v2257_v24 = vpop.f32.mrf.mxu1 }
 0x2ce   :  { %v2304_v25 = vsel %vm244_vm1, %v2256_v21, 0.0  ;;  %v2332_v27 = vmul.f32 %v2256_v21, %v2256_v21  ;;  %v2258_v26 = vadd.f32 %v2257_v24, %v2216_v18  ;;  %v2219_v29 = vpop.f32.mrf.mxu0  ;;  %v2479_v18 = vrot.slane %v4610_v16, %v2478_v5 }
 0x2cf   :  { %v2305_v31 = vrot.slane %v2304_v25, 4  ;;  %v2259_v32 = vpop.f32.mrf.mxu1 }
 0x2d0   :  { %v2376_v33 = vsel %vm244_vm1, %v2332_v27, 0.0  ;;  %v2311_v35 = vsel %vm244_vm1, %v2258_v26, 0.0  ;;  %v2333_v36 = vmul.f32 %v2258_v26, %v2258_v26 }
 0x2d1   :  { %v2306_v37 = vadd.f32 %v2305_v31, %v2304_v25  ;;  %v2377_v38 = vrot.slane %v2376_v33, 4  ;;  %v2312_v28 = vrot.slane %v2311_v35, 4  ;;  %v2260_v39 = vpop.f32.mrf.mxu1  ;;  %v2530_v25 = vrot.slane %v4616_v63, %v2478_v5  ;;  %v2739_v63 = vld [vmem:[%s4711_s6] sm:$0x3]  ;;  %s4429_s6 = smov [#allocation14]  }
 0x2d2   :  { %v2383_v40 = vsel %vm244_vm1, %v2333_v36, 0.0  ;;  %v2748_v39 = vrot.slane %v2739_v63, %v4541_v58  ;;  %s3610_s10 = sshll.u32 %s4429_s6, 4  ;;  %s3611_s10 = int_to_ptr.vmem [resolvable:$true] %s3610_s10 }
 0x2d3   :  { %v2307_v45 = vrot.slane %v2306_v37, 2  ;;  %v2378_v42 = vadd.f32 %v2377_v38, %v2376_v33  ;;  %v2313_v43 = vadd.f32 %v2312_v28, %v2311_v35  ;;  %v2384_v46 = vrot.slane %v2383_v40, 4  ;;  %s4385_s11 = scalar_lea.vmem %s3611_s10, 128  ;;  %p4390_p3 = scmp.lt.s32.totalorder %s3611_s10, %s3611_s10 }
 0x2d4   :  { %v2596_v33 = vrot.slane %v4680_v7, %v4641_v57  ;;  %v2744_v7 = vrot.slane %v2739_v63, %v4535_v55  ;;  %p4386_p2 = scmp.ne.s32.totalorder %s3611_s10, %s4385_s11  ;;  %p4391_p4 = scmp.lt.s32.totalorder %s4385_s11, %s4385_s11 }
 0x2d5   :  { %v2308_v47 = vadd.f32 %v2307_v45, %v2306_v37  ;;  %v2379_v44 = vrot.slane %v2378_v42, 2  ;;  %v2314_v48 = vrot.slane %v2313_v43, 2  ;;  %v2385_v50 = vadd.f32 %v2384_v46, %v2383_v40 }
 0x2d6   :  { %p4392_p5 = por %p4391_p4, %p4390_p3 }
 0x2d7   :  { %v2309_v51 = vrot.slane %v2308_v47, 1  ;;  %v2380_v52 = vadd.f32 %v2379_v44, %v2378_v42  ;;  %v2315_v11 = vadd.f32 %v2314_v48, %v2313_v43  ;;  %v2386_v12 = vrot.slane %v2385_v50, 2 }
 0x2d8   :  { %p4393_p6 = pnand %p4392_p5, %p4386_p2 }
 0x2d9   :  { %v2310_v49 = vadd.f32 %v2309_v51, %v2308_v47  ;;  %v2381_v54 = vrot.slane %v2380_v52, 1  ;;  %v2316_v19 = vrot.slane %v2315_v11, 1  ;;  %v2387_v56 = vadd.f32 %v2386_v12, %v2385_v50 }
 0x2db   :  { %v2324_v59 = vmul.f32 0.25, %v2310_v49  ;;  %v2382_v60 = vadd.f32 %v2381_v54, %v2380_v52  ;;  %v2317_v61 = vadd.f32 %v2316_v19, %v2315_v11  ;;  %v2388_v3 = vrot.slane %v2387_v56, 1 }
 0x2dd   :  { %v2396_v62 = vmul.f32 0.25, %v2382_v60  ;;  %v2404_v13 = vmul.f32 %v2324_v59, %v2324_v59  ;;  %v2325_v15 = vmul.f32 0.25, %v2317_v61  ;;  %v2389_v17 = vadd.f32 %v2388_v3, %v2387_v56 }
 0x2de   :  { %v2420_v6 = vsub.f32 %v2256_v21, %v2324_v59 }
 0x2df   :  { %v2412_v0 = vsub.f32 %v2396_v62, %v2404_v13  ;;  %v2405_v22 = vmul.f32 %v2325_v15, %v2325_v15  ;;  %v2397_v1 = vmul.f32 0.25, %v2389_v17  ;;  %v2421_v14 = vsub.f32 %v2258_v26, %v2325_v15 }
 0x2e1   :  { %v2428_v2 = vadd.f32 1e-05, %v2412_v0  ;;  %v2413_v30 = vsub.f32 %v2397_v1, %v2405_v22 }
 0x2e3   :  { %4261 = vrsqrt.f32 %v2428_v2  ;;  %v2429_v4 = vadd.f32 1e-05, %v2413_v30 }
 0x2e5   :  { %4263 = vrsqrt.f32 %v2429_v4 }
 0x2f0   :  { %v4262_v9 = vpop.eup %4261 }
 0x2f1   :  { %v2444_v10 = vmul.f32 %v4262_v9, %v2420_v6 }
 0x2f2   :  { %v4264_v41 = vpop.eup %4263 }
 0x2f3   :  { %v2494_v23 = vmul.f32 %v2475_v8, %v2444_v10  ;;  %v2445_v24 = vmul.f32 %v4264_v41, %v2421_v14 }
 0x2f5   :  { %v2545_v27 = vadd.f32 %v2526_v20, %v2494_v23  ;;  %v2495_v29 = vmul.f32 %v2479_v18, %v2445_v24 }
 0x2f7   :  { %v2546_v31 = vadd.f32 %v2530_v25, %v2495_v29  ;;  %v2553_v32 = vmax.f32 %v2545_v27, 0.0 }
 0x2f9   :  { %v2554_v53 = vmax.f32 %v2546_v31, 0.0 }
 0x2fb   :  { %v3891_v21 = vpack.c.bf16 %v2554_v53, %v2553_v32 }
 0x2fd   :  { %v2603_v35 = vrot.slane %v3891_v21, %v4641_v57 }
 0x2ff   :  { %v2604_v36 = vcombine.low %v2596_v33, %v2603_v35  ;;  %v4021_v26 = vcombine.low %v2603_v35, %v2603_v35 }
 0x301   :  { %v2777_v16 = vrot.slane %v2604_v36, %v4641_v57  ;;  %v2784_v37 = vrot.slane %v4021_v26, %v4641_v57 }
 0x303   :  { %v2785_v38 = vcombine.high %v2777_v16, %v2777_v16  ;;  %v2786_v28 = vcombine.high %v2784_v37, %v2784_v37 }
 0x305   :  { %3549 = vmatprep.mubr.bf16.mxu0 %v2785_v38  ;;  %3590 = vmatprep.mubr.bf16.mxu1 %v2786_v28 }
 0x306   :  { %3550 = vmatmul.mubr.bf16.vlgmr.msra.gmra.mxu0 %v2777_v16  ;;  %3591 = vmatmul.mubr.bf16.vlgmr.msra.gmra.mxu1 %v2784_v37 }
 0x346   :  { %v3469_v40 = vpop.f32.mrf.mxu0  ;;  %v3510_v45 = vpop.f32.mrf.mxu1 }
 0x347   :  { %v3470_v42 = vadd.f32 %v3469_v40, %v2744_v7 }
 0x348   :  { %v3471_v43 = vpop.f32.mrf.mxu0  ;;  %v3512_v46 = vpop.f32.mrf.mxu1 }
 0x349   :  { %v3511_v57 = vadd.f32 %v3510_v45, %v3470_v42  ;;  %v3472_v47 = vadd.f32 %v3471_v43, %v2748_v39 }
 0x34a   :  { %v3473_v44 = vpop.f32.mrf.mxu0  ;;  %v3514_v48 = vpop.f32.mrf.mxu1 }
 0x34b   :  { %v3513_v50 = vadd.f32 %v3512_v46, %v3472_v47 }
 0x34c   :  { %v3474_v51 = vpop.f32.mrf.mxu0  ;;  %v3515_v52 = vpop.f32.mrf.mxu1 }
 0x3c6   :  { %v3551_v11 = vpop.f32.mrf.mxu0  ;;  %v3592_v12 = vpop.f32.mrf.mxu1 }
 0x3c7   :  { %v3552_v49 = vadd.f32 %v3551_v11, %v3511_v57 }
 0x3c8   :  { %v3553_v54 = vpop.f32.mrf.mxu0  ;;  %v3594_v19 = vpop.f32.mrf.mxu1 }
 0x3c9   :  { %v3554_v55 = vadd.f32 %v3553_v54, %v3513_v50  ;;  %v3593_v59 = vadd.f32 %v3592_v12, %v3552_v49 }
 0x3ca   :  { %v3555_v56 = vpop.f32.mrf.mxu0  ;;  %v3596_v58 = vpop.f32.mrf.mxu1 }
 0x3cb   :  { %v3595_v60 = vadd.f32 %v3594_v19, %v3554_v55 }
 0x3cc   :  { %v3556_v61 = vpop.f32.mrf.mxu0  ;;  %v3597_v3 = vpop.f32.mrf.mxu1 }
 0x3cd   :  { %v3601_v62 = vcombine.low %v3593_v59, %v3595_v60 }
 0x3cf   :  { %3603 = vst [vmem:[#allocation14] sm:$0xff] %v3601_v62 }
 0x3d0   :  { %4396 = shalt.err (!%p4393_p6)
}
 0x3d1   :  { %3613 = dma.vmem_to_hbm [thread:$0]  %s3611_s10, 128, %s4712_s7, [#allocation5]  }
 0x3d2   :  { %4413 = dma.done.wait [#allocation5], 128  }
 0x3d3   :  { %4414 = vsyncadd [#allocation5], 4294967168 }
 0x3d4   :  { %3617 = vsyncpa [#allocation4], 1 }
 0x3d5   :  { %3618 = vsyncpa [#allocation7], 1 }
 0x3d6   :  { %3619 = vsyncpa [#allocation10], 1 }
 0x3d7   :  { %3620 = vsyncpa [#allocation13], 1 }
 0x3d8   :  { %3621 = vsyncpa [#allocation5], 1 }

</bundles_post_ra>
